<compile_context>
chip_gen: v5e
topology: v5e:2x2
jax: 0.10.0
libtpu: 0.0.40
codegen_flags: <defaults>
</compile_context>

<pallas_src>
import functools

import jax
import jax.numpy as jnp
from jax.experimental import pallas as pl
from jax.experimental.pallas import tpu as pltpu


def _slice_kernel(grid_ref, guide_ref, out_ref, *, C, D, GH, H, W, TH):
    """One (batch, row-tile) step of the trilinear slice.

    grid_ref : (1, C, GH, D*W) bf16  x-upsampled bilateral grid of this image; per channel the
                                     layout is (GH rows, D lane-blocks of width W).
    guide_ref: (1, 1, TH, W)         guide-map rows of this tile (z coordinate in [-1, 1]).
    out_ref  : (1, C, TH, W)         sliced coefficients (lane-dense stores).
    """
    f32 = jnp.float32

    # ---- y interpolation matrix wy[h, i] (TH, GH): two taps per row, zeros padding implicit ----
    h0 = pl.program_id(1) * TH
    i_idx = jax.lax.broadcasted_iota(jnp.int32, (TH, GH), 1)
    h_pos = (jax.lax.broadcasted_iota(jnp.int32, (TH, GH), 0) + h0).astype(f32)
    yn = h_pos * (2.0 / (H - 1)) - 1.0
    yc = ((yn + 1.0) * GH - 1.0) * 0.5            # align_corners=False unnormalize
    y0f = jnp.floor(yc)
    fy = yc - y0f
    y0 = y0f.astype(jnp.int32)
    wy = (jnp.where(i_idx == y0, 1.0 - fy, 0.0)
          + jnp.where(i_idx == y0 + 1, fy, 0.0)).astype(jnp.bfloat16)

    # ---- per-pixel depth (z) weights from the guide map, built once per tile (zeros padding) ----
    guide = guide_ref[0, 0].astype(f32)                               # (TH, W)
    zc = ((guide + 1.0) * D - 1.0) * 0.5
    z0f = jnp.floor(zc)
    fz = zc - z0f
    z0 = z0f.astype(jnp.int32)
    wz = [jnp.where(z0 == d, 1.0 - fz, 0.0) + jnp.where(z0 == d - 1, fz, 0.0)
          for d in range(D)]

    # ---- per channel: one bf16 (TH,GH)@(GH,D*W) MXU matmul + f32 z-lerp; direct channel stores --
    for c in range(C):
        up = jnp.dot(wy, grid_ref[0, c], preferred_element_type=f32)  # (TH, D*W) f32
        acc = up[:, 0:W] * wz[0]                                      # init with d=0 term
        for d in range(1, D):
            acc = acc + up[:, d * W:(d + 1) * W] * wz[d]
        out_ref[0, c, :, :] = acc.astype(out_ref.dtype)


def _x_upsampled_grid(bilateral_grid, W):
    """Hoisted x-upsample (batch/row-tile invariant), done once per call in plain JAX.

    (N, C, D, GH, GW) -> (N, C, GH, D*W) bf16, lane blocks ordered by depth d.
    """
    N, C, D, GH, GW = bilateral_grid.shape
    f32 = jnp.float32
    w_pos = jnp.arange(W, dtype=f32)
    xn = w_pos * (2.0 / (W - 1)) - 1.0
    xc = ((xn + 1.0) * GW - 1.0) * 0.5            # align_corners=False unnormalize
    x0f = jnp.floor(xc)
    fx = xc - x0f
    x0 = x0f.astype(jnp.int32)
    j = jnp.arange(GW, dtype=jnp.int32)[:, None]
    wx = (jnp.where(j == x0[None, :], 1.0 - fx[None, :], 0.0)
          + jnp.where(j == x0[None, :] + 1, fx[None, :], 0.0))        # (GW, W), zeros padding
    tmp = jnp.einsum('ncdgk,kw->ncdgw', bilateral_grid.astype(f32), wx,
                     precision=jax.lax.Precision.HIGHEST)             # (N, C, D, GH, W)
    tmp = jnp.transpose(tmp, (0, 1, 3, 2, 4)).reshape(N, C, GH, D * W)
    return tmp.astype(jnp.bfloat16)


def _vmem_capacity_bytes():
    try:
        cap = getattr(pltpu.get_tpu_info(), "vmem_capacity_bytes", None)
        if cap:
            return int(cap)
    except Exception:
        pass
    return 64 * 1024 * 1024  # conservative (v7x per-TensorCore) fallback


def _pick_row_tile(H, W, C, D, GH, N, budget_bytes):
    """Largest legal row tile TH whose per-step working set fits `budget_bytes`.

    Returns (TH, num_row_tiles, estimated_bytes). Legal TH: multiple of 8 dividing H, or H itself;
    if none fits the budget, a multiple-of-8 tile with a ceil-div grid (masked last block) is used.
    """
    fixed = 2 * (C * GH * D * W) * 2               # bf16 grid block, double-buffered
    per_row = (8 * C + 8 * D + 28) * W             # out(x2,f32) + guide(x2,f32) + wz + up + temps
    avail = budget_bytes - fixed
    max_th = int(max(8, avail // per_row)) if avail > 8 * per_row else 8

    cands = [t for t in range(8, H + 1, 8) if H % t == 0]
    if H not in cands:
        cands.append(H)                            # full-height block is always layout-legal
    if N == 1 and H > 8:
        two_step = [t for t in cands if t < H]     # keep >= 2 grid steps for megacore sharding
        if any(t <= max_th for t in two_step):
            cands = two_step

    fitting = [t for t in cands if t <= max_th]
    if fitting:
        th = max(fitting)
        n_tiles = -(-H // th)
    else:
        th = max(8, (max_th // 8) * 8)             # budget-capped fallback; partial last block
        n_tiles = -(-H // th)
    return int(th), int(n_tiles), int(fixed + per_row * th)


def hdrnet_slice(bilateral_grid, guidemap):
    """Pallas TPU forward of HDRNet `Slice`.

    bilateral_grid: (N, C, D, GH, GW) float
    guidemap:       (N, 1, H, W) float   (used directly as the grid_sample z coordinate; values
                                          outside [-1, 1] fall into the zeros-padding region)
    returns:        (N, C, H, W) float  == F.grid_sample(..., 'bilinear', 'zeros',
                                          align_corners=False).squeeze(2)
    """
    N, C, D, GH, GW = bilateral_grid.shape
    Ng, Cg, H, W = guidemap.shape
    assert Ng == N and Cg == 1
    assert H > 1 and W > 1, "Slice needs H, W > 1 (same implicit assumption as the torch module)"

    cap = _vmem_capacity_bytes()
    th, n_row_tiles, est = _pick_row_tile(H, W, C, D, GH, N, int(0.6 * cap))
    vmem_limit = int(min(int(0.9 * cap), max(32 * 1024 * 1024, 2 * est)))

    grid2d = _x_upsampled_grid(bilateral_grid, W)  # (N, C, GH, D*W) bf16, hoisted x-stage

    out_dtype = bilateral_grid.dtype
    flops = 2 * N * C * GH * D * (n_row_tiles * th) * W + 3 * N * C * D * H * W
    bytes_accessed = (N * C * GH * D * W * 2
                      + N * H * W * guidemap.dtype.itemsize
                      + N * C * H * W * jnp.dtype(out_dtype).itemsize)

    kernel = functools.partial(_slice_kernel, C=C, D=D, GH=GH, H=H, W=W, TH=th)
    return pl.pallas_call(
        kernel,
        out_shape=jax.ShapeDtypeStruct((N, C, H, W), out_dtype),
        grid_spec=pltpu.PrefetchScalarGridSpec(
            num_scalar_prefetch=0,
            grid=(N, n_row_tiles),
            in_specs=[
                pl.BlockSpec((1, C, GH, D * W), lambda n, hb: (n, 0, 0, 0)),   # per-image grid
                pl.BlockSpec((1, 1, th, W), lambda n, hb: (n, 0, hb, 0)),      # guide rows
            ],
            out_specs=pl.BlockSpec((1, C, th, W), lambda n, hb: (n, 0, hb, 0)),
        ),
        compiler_params=pltpu.CompilerParams(
            dimension_semantics=("parallel", "parallel"),
            vmem_limit_bytes=vmem_limit,
        ),
        cost_estimate=pl.CostEstimate(flops=int(flops), transcendentals=0,
                                      bytes_accessed=int(bytes_accessed)),
    )(grid2d, guidemap)


def slice_reference(bilateral_grid, guidemap):
    """Pure-JAX reference: 8-corner trilinear grid_sample (align_corners=False, zeros padding)."""
    N, C, D, GH, GW = bilateral_grid.shape
    _, _, H, W = guidemap.shape
    f32 = jnp.float32

    xn = jnp.arange(W, dtype=f32) * (2.0 / (W - 1)) - 1.0
    yn = jnp.arange(H, dtype=f32) * (2.0 / (H - 1)) - 1.0
    xc = ((xn + 1.0) * GW - 1.0) * 0.5                               # (W,)
    yc = ((yn + 1.0) * GH - 1.0) * 0.5                               # (H,)
    zc = ((guidemap[:, 0].astype(f32) + 1.0) * D - 1.0) * 0.5        # (N, H, W)

    x0 = jnp.floor(xc); fx = xc - x0
    y0 = jnp.floor(yc); fy = yc - y0
    z0 = jnp.floor(zc); fz = zc - z0

    grid_t = jnp.transpose(bilateral_grid, (0, 2, 3, 4, 1)).astype(f32)  # (N, D, GH, GW, C)
    n_idx = jnp.arange(N)[:, None, None]

    out = jnp.zeros((N, H, W, C), f32)
    for dz in (0, 1):
        zi = z0 + dz
        wz = ((1.0 - fz) if dz == 0 else fz) * ((zi >= 0) & (zi <= D - 1)).astype(f32)
        zi_c = jnp.clip(zi, 0, D - 1).astype(jnp.int32)
        for dy in (0, 1):
            yi = y0 + dy
            wy = ((1.0 - fy) if dy == 0 else fy) * ((yi >= 0) & (yi <= GH - 1)).astype(f32)
            yi_c = jnp.clip(yi, 0, GH - 1).astype(jnp.int32)
            for dx in (0, 1):
                xi = x0 + dx
                wxv = ((1.0 - fx) if dx == 0 else fx) * ((xi >= 0) & (xi <= GW - 1)).astype(f32)
                xi_c = jnp.clip(xi, 0, GW - 1).astype(jnp.int32)
                wgt = wz * wy[None, :, None] * wxv[None, None, :]                         # (N,H,W)
                vals = grid_t[n_idx, zi_c, yi_c[None, :, None], xi_c[None, None, :]]      # (N,H,W,C)
                out = out + wgt[..., None] * vals
    return jnp.transpose(out, (0, 3, 1, 2))


if __name__ == "__main__":
    key = jax.random.PRNGKey(0)
    k_grid, k_guide = jax.random.split(key)

    # Small HDRNet-like shapes: 12 coeff channels x 8 luma bins on a 16x16 spatial grid,
    # sliced up to a 16 x 128 (lane-dense) full-resolution guide map.
    N, C, D, GH, GW = 2, 12, 8, 16, 16
    H, W = 16, 128
    bilateral_grid = jax.random.uniform(k_grid, (N, C, D, GH, GW), dtype=jnp.float32)
    guidemap = jax.random.uniform(k_guide, (N, 1, H, W), dtype=jnp.float32)

    slice_fn = jax.jit(hdrnet_slice)
    out = jax.block_until_ready(slice_fn(bilateral_grid, guidemap))
    ref = jax.block_until_ready(slice_reference(bilateral_grid, guidemap))

    assert out.shape == (N, C, H, W)
    # tolerance leaves headroom for the bf16 MXU operands (f32 accumulation keeps error ~<1e-2)
    assert jnp.allclose(out, ref, atol=2e-2, rtol=2e-2), "mismatch vs grid_sample reference"
    print("KERNEL_OK")
</pallas_src>

<mosaic_0001>
module attributes {stable_mosaic.version = 11 : i64} {
  func.func @_slice_kernel(%arg0: i32, %arg1: i32, %arg2: memref<1x12x16x1024xbf16, #tpu.memory_space<vmem>>, %arg3: memref<1x1x16x128xf32, #tpu.memory_space<vmem>>, %arg4: memref<1x12x16x128xf32, #tpu.memory_space<vmem>>) attributes {dimension_semantics = [#tpu.dimension_semantics<parallel>, #tpu.dimension_semantics<parallel>], iteration_bounds = array<i64: 2, 1>, scalar_prefetch = 0 : i64, scratch_operands = 0 : i64, tpu.core_type = #tpu.core_type<tc>, window_params = [{transform_indices = @transform_0, window_bounds = array<i64: 1, 12, 16, 1024>}, {transform_indices = @transform_1, window_bounds = array<i64: 1, 1, 16, 128>}, {transform_indices = @transform_2, window_bounds = array<i64: 1, 12, 16, 128>}]} {
    %c16_i32 = arith.constant 16 : i32
    %0 = arith.muli %arg1, %c16_i32 : i32
    %1 = tpu.iota {dimensions = array<i32: 1>} : vector<16x16xi32>
    %2 = tpu.iota {dimensions = array<i32: 0>} : vector<16x16xi32>
    %3 = vector.broadcast %0 : i32 to vector<16x16xi32>
    %4 = arith.addi %2, %3 : vector<16x16xi32>
    %5 = arith.sitofp %4 : vector<16x16xi32> to vector<16x16xf32>
    %cst = arith.constant 0.13333334 : f32
    %6 = vector.broadcast %cst : f32 to vector<16x16xf32>
    %7 = arith.mulf %5, %6 : vector<16x16xf32>
    %cst_0 = arith.constant 1.000000e+00 : f32
    %8 = vector.broadcast %cst_0 : f32 to vector<16x16xf32>
    %9 = arith.subf %7, %8 : vector<16x16xf32>
    %cst_1 = arith.constant 1.000000e+00 : f32
    %10 = vector.broadcast %cst_1 : f32 to vector<16x16xf32>
    %11 = arith.addf %9, %10 : vector<16x16xf32>
    %cst_2 = arith.constant 1.600000e+01 : f32
    %12 = vector.broadcast %cst_2 : f32 to vector<16x16xf32>
    %13 = arith.mulf %11, %12 : vector<16x16xf32>
    %cst_3 = arith.constant 1.000000e+00 : f32
    %14 = vector.broadcast %cst_3 : f32 to vector<16x16xf32>
    %15 = arith.subf %13, %14 : vector<16x16xf32>
    %cst_4 = arith.constant 5.000000e-01 : f32
    %16 = vector.broadcast %cst_4 : f32 to vector<16x16xf32>
    %17 = arith.mulf %15, %16 : vector<16x16xf32>
    %18 = math.floor %17 : vector<16x16xf32>
    %19 = arith.subf %17, %18 : vector<16x16xf32>
    %20 = arith.fptosi %18 : vector<16x16xf32> to vector<16x16xi32>
    %21 = arith.cmpi eq, %1, %20 : vector<16x16xi32>
    %cst_5 = arith.constant 1.000000e+00 : f32
    %22 = vector.broadcast %cst_5 : f32 to vector<16x16xf32>
    %23 = arith.subf %22, %19 : vector<16x16xf32>
    %cst_6 = arith.constant 0.000000e+00 : f32
    %24 = vector.broadcast %cst_6 : f32 to vector<16x16xf32>
    %25 = arith.select %21, %23, %24 : vector<16x16xi1>, vector<16x16xf32>
    %c1_i32 = arith.constant 1 : i32
    %26 = vector.broadcast %c1_i32 : i32 to vector<16x16xi32>
    %27 = arith.addi %20, %26 : vector<16x16xi32>
    %28 = arith.cmpi eq, %1, %27 : vector<16x16xi32>
    %cst_7 = arith.constant 0.000000e+00 : f32
    %29 = vector.broadcast %cst_7 : f32 to vector<16x16xf32>
    %30 = arith.select %28, %19, %29 : vector<16x16xi1>, vector<16x16xf32>
    %31 = arith.addf %25, %30 : vector<16x16xf32>
    %32 = arith.truncf %31 : vector<16x16xf32> to vector<16x16xbf16>
    %c0 = arith.constant 0 : index
    %c0_8 = arith.constant 0 : index
    %c0_9 = arith.constant 0 : index
    %c0_10 = arith.constant 0 : index
    %33 = vector.load %arg3[%c0, %c0_8, %c0_9, %c0_10] : memref<1x1x16x128xf32, #tpu.memory_space<vmem>>, vector<1x1x16x128xf32>
    %34 = vector.shape_cast %33 : vector<1x1x16x128xf32> to vector<16x128xf32>
    %cst_11 = arith.constant 1.000000e+00 : f32
    %35 = vector.broadcast %cst_11 : f32 to vector<16x128xf32>
    %36 = arith.addf %34, %35 : vector<16x128xf32>
    %cst_12 = arith.constant 8.000000e+00 : f32
    %37 = vector.broadcast %cst_12 : f32 to vector<16x128xf32>
    %38 = arith.mulf %36, %37 : vector<16x128xf32>
    %cst_13 = arith.constant 1.000000e+00 : f32
    %39 = vector.broadcast %cst_13 : f32 to vector<16x128xf32>
    %40 = arith.subf %38, %39 : vector<16x128xf32>
    %cst_14 = arith.constant 5.000000e-01 : f32
    %41 = vector.broadcast %cst_14 : f32 to vector<16x128xf32>
    %42 = arith.mulf %40, %41 : vector<16x128xf32>
    %43 = math.floor %42 : vector<16x128xf32>
    %44 = arith.subf %42, %43 : vector<16x128xf32>
    %45 = arith.fptosi %43 : vector<16x128xf32> to vector<16x128xi32>
    %c0_i32 = arith.constant 0 : i32
    %46 = vector.broadcast %c0_i32 : i32 to vector<16x128xi32>
    %47 = arith.cmpi eq, %45, %46 : vector<16x128xi32>
    %cst_15 = arith.constant 1.000000e+00 : f32
    %48 = vector.broadcast %cst_15 : f32 to vector<16x128xf32>
    %49 = arith.subf %48, %44 : vector<16x128xf32>
    %cst_16 = arith.constant 0.000000e+00 : f32
    %50 = vector.broadcast %cst_16 : f32 to vector<16x128xf32>
    %51 = arith.select %47, %49, %50 : vector<16x128xi1>, vector<16x128xf32>
    %c-1_i32 = arith.constant -1 : i32
    %52 = vector.broadcast %c-1_i32 : i32 to vector<16x128xi32>
    %53 = arith.cmpi eq, %45, %52 : vector<16x128xi32>
    %cst_17 = arith.constant 0.000000e+00 : f32
    %54 = vector.broadcast %cst_17 : f32 to vector<16x128xf32>
    %55 = arith.select %53, %44, %54 : vector<16x128xi1>, vector<16x128xf32>
    %56 = arith.addf %51, %55 : vector<16x128xf32>
    %c1_i32_18 = arith.constant 1 : i32
    %57 = vector.broadcast %c1_i32_18 : i32 to vector<16x128xi32>
    %58 = arith.cmpi eq, %45, %57 : vector<16x128xi32>
    %cst_19 = arith.constant 1.000000e+00 : f32
    %59 = vector.broadcast %cst_19 : f32 to vector<16x128xf32>
    %60 = arith.subf %59, %44 : vector<16x128xf32>
    %cst_20 = arith.constant 0.000000e+00 : f32
    %61 = vector.broadcast %cst_20 : f32 to vector<16x128xf32>
    %62 = arith.select %58, %60, %61 : vector<16x128xi1>, vector<16x128xf32>
    %c0_i32_21 = arith.constant 0 : i32
    %63 = vector.broadcast %c0_i32_21 : i32 to vector<16x128xi32>
    %64 = arith.cmpi eq, %45, %63 : vector<16x128xi32>
    %cst_22 = arith.constant 0.000000e+00 : f32
    %65 = vector.broadcast %cst_22 : f32 to vector<16x128xf32>
    %66 = arith.select %64, %44, %65 : vector<16x128xi1>, vector<16x128xf32>
    %67 = arith.addf %62, %66 : vector<16x128xf32>
    %c2_i32 = arith.constant 2 : i32
    %68 = vector.broadcast %c2_i32 : i32 to vector<16x128xi32>
    %69 = arith.cmpi eq, %45, %68 : vector<16x128xi32>
    %cst_23 = arith.constant 1.000000e+00 : f32
    %70 = vector.broadcast %cst_23 : f32 to vector<16x128xf32>
    %71 = arith.subf %70, %44 : vector<16x128xf32>
    %cst_24 = arith.constant 0.000000e+00 : f32
    %72 = vector.broadcast %cst_24 : f32 to vector<16x128xf32>
    %73 = arith.select %69, %71, %72 : vector<16x128xi1>, vector<16x128xf32>
    %c1_i32_25 = arith.constant 1 : i32
    %74 = vector.broadcast %c1_i32_25 : i32 to vector<16x128xi32>
    %75 = arith.cmpi eq, %45, %74 : vector<16x128xi32>
    %cst_26 = arith.constant 0.000000e+00 : f32
    %76 = vector.broadcast %cst_26 : f32 to vector<16x128xf32>
    %77 = arith.select %75, %44, %76 : vector<16x128xi1>, vector<16x128xf32>
    %78 = arith.addf %73, %77 : vector<16x128xf32>
    %c3_i32 = arith.constant 3 : i32
    %79 = vector.broadcast %c3_i32 : i32 to vector<16x128xi32>
    %80 = arith.cmpi eq, %45, %79 : vector<16x128xi32>
    %cst_27 = arith.constant 1.000000e+00 : f32
    %81 = vector.broadcast %cst_27 : f32 to vector<16x128xf32>
    %82 = arith.subf %81, %44 : vector<16x128xf32>
    %cst_28 = arith.constant 0.000000e+00 : f32
    %83 = vector.broadcast %cst_28 : f32 to vector<16x128xf32>
    %84 = arith.select %80, %82, %83 : vector<16x128xi1>, vector<16x128xf32>
    %c2_i32_29 = arith.constant 2 : i32
    %85 = vector.broadcast %c2_i32_29 : i32 to vector<16x128xi32>
    %86 = arith.cmpi eq, %45, %85 : vector<16x128xi32>
    %cst_30 = arith.constant 0.000000e+00 : f32
    %87 = vector.broadcast %cst_30 : f32 to vector<16x128xf32>
    %88 = arith.select %86, %44, %87 : vector<16x128xi1>, vector<16x128xf32>
    %89 = arith.addf %84, %88 : vector<16x128xf32>
    %c4_i32 = arith.constant 4 : i32
    %90 = vector.broadcast %c4_i32 : i32 to vector<16x128xi32>
    %91 = arith.cmpi eq, %45, %90 : vector<16x128xi32>
    %cst_31 = arith.constant 1.000000e+00 : f32
    %92 = vector.broadcast %cst_31 : f32 to vector<16x128xf32>
    %93 = arith.subf %92, %44 : vector<16x128xf32>
    %cst_32 = arith.constant 0.000000e+00 : f32
    %94 = vector.broadcast %cst_32 : f32 to vector<16x128xf32>
    %95 = arith.select %91, %93, %94 : vector<16x128xi1>, vector<16x128xf32>
    %c3_i32_33 = arith.constant 3 : i32
    %96 = vector.broadcast %c3_i32_33 : i32 to vector<16x128xi32>
    %97 = arith.cmpi eq, %45, %96 : vector<16x128xi32>
    %cst_34 = arith.constant 0.000000e+00 : f32
    %98 = vector.broadcast %cst_34 : f32 to vector<16x128xf32>
    %99 = arith.select %97, %44, %98 : vector<16x128xi1>, vector<16x128xf32>
    %100 = arith.addf %95, %99 : vector<16x128xf32>
    %c5_i32 = arith.constant 5 : i32
    %101 = vector.broadcast %c5_i32 : i32 to vector<16x128xi32>
    %102 = arith.cmpi eq, %45, %101 : vector<16x128xi32>
    %cst_35 = arith.constant 1.000000e+00 : f32
    %103 = vector.broadcast %cst_35 : f32 to vector<16x128xf32>
    %104 = arith.subf %103, %44 : vector<16x128xf32>
    %cst_36 = arith.constant 0.000000e+00 : f32
    %105 = vector.broadcast %cst_36 : f32 to vector<16x128xf32>
    %106 = arith.select %102, %104, %105 : vector<16x128xi1>, vector<16x128xf32>
    %c4_i32_37 = arith.constant 4 : i32
    %107 = vector.broadcast %c4_i32_37 : i32 to vector<16x128xi32>
    %108 = arith.cmpi eq, %45, %107 : vector<16x128xi32>
    %cst_38 = arith.constant 0.000000e+00 : f32
    %109 = vector.broadcast %cst_38 : f32 to vector<16x128xf32>
    %110 = arith.select %108, %44, %109 : vector<16x128xi1>, vector<16x128xf32>
    %111 = arith.addf %106, %110 : vector<16x128xf32>
    %c6_i32 = arith.constant 6 : i32
    %112 = vector.broadcast %c6_i32 : i32 to vector<16x128xi32>
    %113 = arith.cmpi eq, %45, %112 : vector<16x128xi32>
    %cst_39 = arith.constant 1.000000e+00 : f32
    %114 = vector.broadcast %cst_39 : f32 to vector<16x128xf32>
    %115 = arith.subf %114, %44 : vector<16x128xf32>
    %cst_40 = arith.constant 0.000000e+00 : f32
    %116 = vector.broadcast %cst_40 : f32 to vector<16x128xf32>
    %117 = arith.select %113, %115, %116 : vector<16x128xi1>, vector<16x128xf32>
    %c5_i32_41 = arith.constant 5 : i32
    %118 = vector.broadcast %c5_i32_41 : i32 to vector<16x128xi32>
    %119 = arith.cmpi eq, %45, %118 : vector<16x128xi32>
    %cst_42 = arith.constant 0.000000e+00 : f32
    %120 = vector.broadcast %cst_42 : f32 to vector<16x128xf32>
    %121 = arith.select %119, %44, %120 : vector<16x128xi1>, vector<16x128xf32>
    %122 = arith.addf %117, %121 : vector<16x128xf32>
    %c7_i32 = arith.constant 7 : i32
    %123 = vector.broadcast %c7_i32 : i32 to vector<16x128xi32>
    %124 = arith.cmpi eq, %45, %123 : vector<16x128xi32>
    %cst_43 = arith.constant 1.000000e+00 : f32
    %125 = vector.broadcast %cst_43 : f32 to vector<16x128xf32>
    %126 = arith.subf %125, %44 : vector<16x128xf32>
    %cst_44 = arith.constant 0.000000e+00 : f32
    %127 = vector.broadcast %cst_44 : f32 to vector<16x128xf32>
    %128 = arith.select %124, %126, %127 : vector<16x128xi1>, vector<16x128xf32>
    %c6_i32_45 = arith.constant 6 : i32
    %129 = vector.broadcast %c6_i32_45 : i32 to vector<16x128xi32>
    %130 = arith.cmpi eq, %45, %129 : vector<16x128xi32>
    %cst_46 = arith.constant 0.000000e+00 : f32
    %131 = vector.broadcast %cst_46 : f32 to vector<16x128xf32>
    %132 = arith.select %130, %44, %131 : vector<16x128xi1>, vector<16x128xf32>
    %133 = arith.addf %128, %132 : vector<16x128xf32>
    %c0_47 = arith.constant 0 : index
    %c0_48 = arith.constant 0 : index
    %c0_49 = arith.constant 0 : index
    %c0_50 = arith.constant 0 : index
    %134 = vector.load %arg2[%c0_47, %c0_48, %c0_49, %c0_50] : memref<1x12x16x1024xbf16, #tpu.memory_space<vmem>>, vector<1x1x16x1024xbf16>
    %135 = vector.shape_cast %134 : vector<1x1x16x1024xbf16> to vector<16x1024xbf16>
    %cst_51 = arith.constant dense<0.000000e+00> : vector<16x1024xf32>
    %136 = tpu.matmul %32, %135, %cst_51 {dimension_numbers = #tpu.dot_dimension_numbers<[1], [0], [0], [1], [0, 0, 1, 1], [], []>} : vector<16x16xbf16>, vector<16x1024xbf16>, vector<16x1024xf32> -> vector<16x1024xf32>
    %137 = vector.extract_strided_slice %136 {offsets = [0, 0], sizes = [16, 128], strides = [1, 1]} : vector<16x1024xf32> to vector<16x128xf32>
    %138 = arith.mulf %137, %56 : vector<16x128xf32>
    %139 = vector.extract_strided_slice %136 {offsets = [0, 128], sizes = [16, 128], strides = [1, 1]} : vector<16x1024xf32> to vector<16x128xf32>
    %140 = arith.mulf %139, %67 : vector<16x128xf32>
    %141 = arith.addf %138, %140 : vector<16x128xf32>
    %142 = vector.extract_strided_slice %136 {offsets = [0, 256], sizes = [16, 128], strides = [1, 1]} : vector<16x1024xf32> to vector<16x128xf32>
    %143 = arith.mulf %142, %78 : vector<16x128xf32>
    %144 = arith.addf %141, %143 : vector<16x128xf32>
    %145 = vector.extract_strided_slice %136 {offsets = [0, 384], sizes = [16, 128], strides = [1, 1]} : vector<16x1024xf32> to vector<16x128xf32>
    %146 = arith.mulf %145, %89 : vector<16x128xf32>
    %147 = arith.addf %144, %146 : vector<16x128xf32>
    %148 = vector.extract_strided_slice %136 {offsets = [0, 512], sizes = [16, 128], strides = [1, 1]} : vector<16x1024xf32> to vector<16x128xf32>
    %149 = arith.mulf %148, %100 : vector<16x128xf32>
    %150 = arith.addf %147, %149 : vector<16x128xf32>
    %151 = vector.extract_strided_slice %136 {offsets = [0, 640], sizes = [16, 128], strides = [1, 1]} : vector<16x1024xf32> to vector<16x128xf32>
    %152 = arith.mulf %151, %111 : vector<16x128xf32>
    %153 = arith.addf %150, %152 : vector<16x128xf32>
    %154 = vector.extract_strided_slice %136 {offsets = [0, 768], sizes = [16, 128], strides = [1, 1]} : vector<16x1024xf32> to vector<16x128xf32>
    %155 = arith.mulf %154, %122 : vector<16x128xf32>
    %156 = arith.addf %153, %155 : vector<16x128xf32>
    %157 = vector.extract_strided_slice %136 {offsets = [0, 896], sizes = [16, 128], strides = [1, 1]} : vector<16x1024xf32> to vector<16x128xf32>
    %158 = arith.mulf %157, %133 : vector<16x128xf32>
    %159 = arith.addf %156, %158 : vector<16x128xf32>
    %c0_52 = arith.constant 0 : index
    %c0_53 = arith.constant 0 : index
    %c0_54 = arith.constant 0 : index
    %c0_55 = arith.constant 0 : index
    %160 = vector.load %arg4[%c0_52, %c0_53, %c0_54, %c0_55] : memref<1x12x16x128xf32, #tpu.memory_space<vmem>>, vector<1x1x16x128xf32>
    %161 = vector.shape_cast %160 : vector<1x1x16x128xf32> to vector<16x128xf32>
    %162 = vector.shape_cast %159 : vector<16x128xf32> to vector<1x1x16x128xf32>
    tpu.vector_store %arg4[%c0_52, %c0_53, %c0_54, %c0_55], %162 {strides = array<i32>} : memref<1x12x16x128xf32, #tpu.memory_space<vmem>>, vector<1x1x16x128xf32>,
    %c0_56 = arith.constant 0 : index
    %c1 = arith.constant 1 : index
    %c0_57 = arith.constant 0 : index
    %c0_58 = arith.constant 0 : index
    %163 = vector.load %arg2[%c0_56, %c1, %c0_57, %c0_58] : memref<1x12x16x1024xbf16, #tpu.memory_space<vmem>>, vector<1x1x16x1024xbf16>
    %164 = vector.shape_cast %163 : vector<1x1x16x1024xbf16> to vector<16x1024xbf16>
    %cst_59 = arith.constant dense<0.000000e+00> : vector<16x1024xf32>
    %165 = tpu.matmul %32, %164, %cst_59 {dimension_numbers = #tpu.dot_dimension_numbers<[1], [0], [0], [1], [0, 0, 1, 1], [], []>} : vector<16x16xbf16>, vector<16x1024xbf16>, vector<16x1024xf32> -> vector<16x1024xf32>
    %166 = vector.extract_strided_slice %165 {offsets = [0, 0], sizes = [16, 128], strides = [1, 1]} : vector<16x1024xf32> to vector<16x128xf32>
    %167 = arith.mulf %166, %56 : vector<16x128xf32>
    %168 = vector.extract_strided_slice %165 {offsets = [0, 128], sizes = [16, 128], strides = [1, 1]} : vector<16x1024xf32> to vector<16x128xf32>
    %169 = arith.mulf %168, %67 : vector<16x128xf32>
    %170 = arith.addf %167, %169 : vector<16x128xf32>
    %171 = vector.extract_strided_slice %165 {offsets = [0, 256], sizes = [16, 128], strides = [1, 1]} : vector<16x1024xf32> to vector<16x128xf32>
    %172 = arith.mulf %171, %78 : vector<16x128xf32>
    %173 = arith.addf %170, %172 : vector<16x128xf32>
    %174 = vector.extract_strided_slice %165 {offsets = [0, 384], sizes = [16, 128], strides = [1, 1]} : vector<16x1024xf32> to vector<16x128xf32>
    %175 = arith.mulf %174, %89 : vector<16x128xf32>
    %176 = arith.addf %173, %175 : vector<16x128xf32>
    %177 = vector.extract_strided_slice %165 {offsets = [0, 512], sizes = [16, 128], strides = [1, 1]} : vector<16x1024xf32> to vector<16x128xf32>
    %178 = arith.mulf %177, %100 : vector<16x128xf32>
    %179 = arith.addf %176, %178 : vector<16x128xf32>
    %180 = vector.extract_strided_slice %165 {offsets = [0, 640], sizes = [16, 128], strides = [1, 1]} : vector<16x1024xf32> to vector<16x128xf32>
    %181 = arith.mulf %180, %111 : vector<16x128xf32>
    %182 = arith.addf %179, %181 : vector<16x128xf32>
    %183 = vector.extract_strided_slice %165 {offsets = [0, 768], sizes = [16, 128], strides = [1, 1]} : vector<16x1024xf32> to vector<16x128xf32>
    %184 = arith.mulf %183, %122 : vector<16x128xf32>
    %185 = arith.addf %182, %184 : vector<16x128xf32>
    %186 = vector.extract_strided_slice %165 {offsets = [0, 896], sizes = [16, 128], strides = [1, 1]} : vector<16x1024xf32> to vector<16x128xf32>
    %187 = arith.mulf %186, %133 : vector<16x128xf32>
    %188 = arith.addf %185, %187 : vector<16x128xf32>
    %c0_60 = arith.constant 0 : index
    %c1_61 = arith.constant 1 : index
    %c0_62 = arith.constant 0 : index
    %c0_63 = arith.constant 0 : index
    %189 = vector.load %arg4[%c0_60, %c1_61, %c0_62, %c0_63] : memref<1x12x16x128xf32, #tpu.memory_space<vmem>>, vector<1x1x16x128xf32>
    %190 = vector.shape_cast %189 : vector<1x1x16x128xf32> to vector<16x128xf32>
    %191 = vector.shape_cast %188 : vector<16x128xf32> to vector<1x1x16x128xf32>
    tpu.vector_store %arg4[%c0_60, %c1_61, %c0_62, %c0_63], %191 {strides = array<i32>} : memref<1x12x16x128xf32, #tpu.memory_space<vmem>>, vector<1x1x16x128xf32>,
    %c0_64 = arith.constant 0 : index
    %c2 = arith.constant 2 : index
    %c0_65 = arith.constant 0 : index
    %c0_66 = arith.constant 0 : index
    %192 = vector.load %arg2[%c0_64, %c2, %c0_65, %c0_66] : memref<1x12x16x1024xbf16, #tpu.memory_space<vmem>>, vector<1x1x16x1024xbf16>
    %193 = vector.shape_cast %192 : vector<1x1x16x1024xbf16> to vector<16x1024xbf16>
    %cst_67 = arith.constant dense<0.000000e+00> : vector<16x1024xf32>
    %194 = tpu.matmul %32, %193, %cst_67 {dimension_numbers = #tpu.dot_dimension_numbers<[1], [0], [0], [1], [0, 0, 1, 1], [], []>} : vector<16x16xbf16>, vector<16x1024xbf16>, vector<16x1024xf32> -> vector<16x1024xf32>
    %195 = vector.extract_strided_slice %194 {offsets = [0, 0], sizes = [16, 128], strides = [1, 1]} : vector<16x1024xf32> to vector<16x128xf32>
    %196 = arith.mulf %195, %56 : vector<16x128xf32>
    %197 = vector.extract_strided_slice %194 {offsets = [0, 128], sizes = [16, 128], strides = [1, 1]} : vector<16x1024xf32> to vector<16x128xf32>
    %198 = arith.mulf %197, %67 : vector<16x128xf32>
    %199 = arith.addf %196, %198 : vector<16x128xf32>
    %200 = vector.extract_strided_slice %194 {offsets = [0, 256], sizes = [16, 128], strides = [1, 1]} : vector<16x1024xf32> to vector<16x128xf32>
    %201 = arith.mulf %200, %78 : vector<16x128xf32>
    %202 = arith.addf %199, %201 : vector<16x128xf32>
    %203 = vector.extract_strided_slice %194 {offsets = [0, 384], sizes = [16, 128], strides = [1, 1]} : vector<16x1024xf32> to vector<16x128xf32>
    %204 = arith.mulf %203, %89 : vector<16x128xf32>
    %205 = arith.addf %202, %204 : vector<16x128xf32>
    %206 = vector.extract_strided_slice %194 {offsets = [0, 512], sizes = [16, 128], strides = [1, 1]} : vector<16x1024xf32> to vector<16x128xf32>
    %207 = arith.mulf %206, %100 : vector<16x128xf32>
    %208 = arith.addf %205, %207 : vector<16x128xf32>
    %209 = vector.extract_strided_slice %194 {offsets = [0, 640], sizes = [16, 128], strides = [1, 1]} : vector<16x1024xf32> to vector<16x128xf32>
    %210 = arith.mulf %209, %111 : vector<16x128xf32>
    %211 = arith.addf %208, %210 : vector<16x128xf32>
    %212 = vector.extract_strided_slice %194 {offsets = [0, 768], sizes = [16, 128], strides = [1, 1]} : vector<16x1024xf32> to vector<16x128xf32>
    %213 = arith.mulf %212, %122 : vector<16x128xf32>
    %214 = arith.addf %211, %213 : vector<16x128xf32>
    %215 = vector.extract_strided_slice %194 {offsets = [0, 896], sizes = [16, 128], strides = [1, 1]} : vector<16x1024xf32> to vector<16x128xf32>
    %216 = arith.mulf %215, %133 : vector<16x128xf32>
    %217 = arith.addf %214, %216 : vector<16x128xf32>
    %c0_68 = arith.constant 0 : index
    %c2_69 = arith.constant 2 : index
    %c0_70 = arith.constant 0 : index
    %c0_71 = arith.constant 0 : index
    %218 = vector.load %arg4[%c0_68, %c2_69, %c0_70, %c0_71] : memref<1x12x16x128xf32, #tpu.memory_space<vmem>>, vector<1x1x16x128xf32>
    %219 = vector.shape_cast %218 : vector<1x1x16x128xf32> to vector<16x128xf32>
    %220 = vector.shape_cast %217 : vector<16x128xf32> to vector<1x1x16x128xf32>
    tpu.vector_store %arg4[%c0_68, %c2_69, %c0_70, %c0_71], %220 {strides = array<i32>} : memref<1x12x16x128xf32, #tpu.memory_space<vmem>>, vector<1x1x16x128xf32>,
    %c0_72 = arith.constant 0 : index
    %c3 = arith.constant 3 : index
    %c0_73 = arith.constant 0 : index
    %c0_74 = arith.constant 0 : index
    %221 = vector.load %arg2[%c0_72, %c3, %c0_73, %c0_74] : memref<1x12x16x1024xbf16, #tpu.memory_space<vmem>>, vector<1x1x16x1024xbf16>
    %222 = vector.shape_cast %221 : vector<1x1x16x1024xbf16> to vector<16x1024xbf16>
    %cst_75 = arith.constant dense<0.000000e+00> : vector<16x1024xf32>
    %223 = tpu.matmul %32, %222, %cst_75 {dimension_numbers = #tpu.dot_dimension_numbers<[1], [0], [0], [1], [0, 0, 1, 1], [], []>} : vector<16x16xbf16>, vector<16x1024xbf16>, vector<16x1024xf32> -> vector<16x1024xf32>
    %224 = vector.extract_strided_slice %223 {offsets = [0, 0], sizes = [16, 128], strides = [1, 1]} : vector<16x1024xf32> to vector<16x128xf32>
    %225 = arith.mulf %224, %56 : vector<16x128xf32>
    %226 = vector.extract_strided_slice %223 {offsets = [0, 128], sizes = [16, 128], strides = [1, 1]} : vector<16x1024xf32> to vector<16x128xf32>
    %227 = arith.mulf %226, %67 : vector<16x128xf32>
    %228 = arith.addf %225, %227 : vector<16x128xf32>
    %229 = vector.extract_strided_slice %223 {offsets = [0, 256], sizes = [16, 128], strides = [1, 1]} : vector<16x1024xf32> to vector<16x128xf32>
    %230 = arith.mulf %229, %78 : vector<16x128xf32>
    %231 = arith.addf %228, %230 : vector<16x128xf32>
    %232 = vector.extract_strided_slice %223 {offsets = [0, 384], sizes = [16, 128], strides = [1, 1]} : vector<16x1024xf32> to vector<16x128xf32>
    %233 = arith.mulf %232, %89 : vector<16x128xf32>
    %234 = arith.addf %231, %233 : vector<16x128xf32>
    %235 = vector.extract_strided_slice %223 {offsets = [0, 512], sizes = [16, 128], strides = [1, 1]} : vector<16x1024xf32> to vector<16x128xf32>
    %236 = arith.mulf %235, %100 : vector<16x128xf32>
    %237 = arith.addf %234, %236 : vector<16x128xf32>
    %238 = vector.extract_strided_slice %223 {offsets = [0, 640], sizes = [16, 128], strides = [1, 1]} : vector<16x1024xf32> to vector<16x128xf32>
    %239 = arith.mulf %238, %111 : vector<16x128xf32>
    %240 = arith.addf %237, %239 : vector<16x128xf32>
    %241 = vector.extract_strided_slice %223 {offsets = [0, 768], sizes = [16, 128], strides = [1, 1]} : vector<16x1024xf32> to vector<16x128xf32>
    %242 = arith.mulf %241, %122 : vector<16x128xf32>
    %243 = arith.addf %240, %242 : vector<16x128xf32>
    %244 = vector.extract_strided_slice %223 {offsets = [0, 896], sizes = [16, 128], strides = [1, 1]} : vector<16x1024xf32> to vector<16x128xf32>
    %245 = arith.mulf %244, %133 : vector<16x128xf32>
    %246 = arith.addf %243, %245 : vector<16x128xf32>
    %c0_76 = arith.constant 0 : index
    %c3_77 = arith.constant 3 : index
    %c0_78 = arith.constant 0 : index
    %c0_79 = arith.constant 0 : index
    %247 = vector.load %arg4[%c0_76, %c3_77, %c0_78, %c0_79] : memref<1x12x16x128xf32, #tpu.memory_space<vmem>>, vector<1x1x16x128xf32>
    %248 = vector.shape_cast %247 : vector<1x1x16x128xf32> to vector<16x128xf32>
    %249 = vector.shape_cast %246 : vector<16x128xf32> to vector<1x1x16x128xf32>
    tpu.vector_store %arg4[%c0_76, %c3_77, %c0_78, %c0_79], %249 {strides = array<i32>} : memref<1x12x16x128xf32, #tpu.memory_space<vmem>>, vector<1x1x16x128xf32>,
    %c0_80 = arith.constant 0 : index
    %c4 = arith.constant 4 : index
    %c0_81 = arith.constant 0 : index
    %c0_82 = arith.constant 0 : index
    %250 = vector.load %arg2[%c0_80, %c4, %c0_81, %c0_82] : memref<1x12x16x1024xbf16, #tpu.memory_space<vmem>>, vector<1x1x16x1024xbf16>
    %251 = vector.shape_cast %250 : vector<1x1x16x1024xbf16> to vector<16x1024xbf16>
    %cst_83 = arith.constant dense<0.000000e+00> : vector<16x1024xf32>
    %252 = tpu.matmul %32, %251, %cst_83 {dimension_numbers = #tpu.dot_dimension_numbers<[1], [0], [0], [1], [0, 0, 1, 1], [], []>} : vector<16x16xbf16>, vector<16x1024xbf16>, vector<16x1024xf32> -> vector<16x1024xf32>
    %253 = vector.extract_strided_slice %252 {offsets = [0, 0], sizes = [16, 128], strides = [1, 1]} : vector<16x1024xf32> to vector<16x128xf32>
    %254 = arith.mulf %253, %56 : vector<16x128xf32>
    %255 = vector.extract_strided_slice %252 {offsets = [0, 128], sizes = [16, 128], strides = [1, 1]} : vector<16x1024xf32> to vector<16x128xf32>
    %256 = arith.mulf %255, %67 : vector<16x128xf32>
    %257 = arith.addf %254, %256 : vector<16x128xf32>
    %258 = vector.extract_strided_slice %252 {offsets = [0, 256], sizes = [16, 128], strides = [1, 1]} : vector<16x1024xf32> to vector<16x128xf32>
    %259 = arith.mulf %258, %78 : vector<16x128xf32>
    %260 = arith.addf %257, %259 : vector<16x128xf32>
    %261 = vector.extract_strided_slice %252 {offsets = [0, 384], sizes = [16, 128], strides = [1, 1]} : vector<16x1024xf32> to vector<16x128xf32>
    %262 = arith.mulf %261, %89 : vector<16x128xf32>
    %263 = arith.addf %260, %262 : vector<16x128xf32>
    %264 = vector.extract_strided_slice %252 {offsets = [0, 512], sizes = [16, 128], strides = [1, 1]} : vector<16x1024xf32> to vector<16x128xf32>
    %265 = arith.mulf %264, %100 : vector<16x128xf32>
    %266 = arith.addf %263, %265 : vector<16x128xf32>
    %267 = vector.extract_strided_slice %252 {offsets = [0, 640], sizes = [16, 128], strides = [1, 1]} : vector<16x1024xf32> to vector<16x128xf32>
    %268 = arith.mulf %267, %111 : vector<16x128xf32>
    %269 = arith.addf %266, %268 : vector<16x128xf32>
    %270 = vector.extract_strided_slice %252 {offsets = [0, 768], sizes = [16, 128], strides = [1, 1]} : vector<16x1024xf32> to vector<16x128xf32>
    %271 = arith.mulf %270, %122 : vector<16x128xf32>
    %272 = arith.addf %269, %271 : vector<16x128xf32>
    %273 = vector.extract_strided_slice %252 {offsets = [0, 896], sizes = [16, 128], strides = [1, 1]} : vector<16x1024xf32> to vector<16x128xf32>
    %274 = arith.mulf %273, %133 : vector<16x128xf32>
    %275 = arith.addf %272, %274 : vector<16x128xf32>
    %c0_84 = arith.constant 0 : index
    %c4_85 = arith.constant 4 : index
    %c0_86 = arith.constant 0 : index
    %c0_87 = arith.constant 0 : index
    %276 = vector.load %arg4[%c0_84, %c4_85, %c0_86, %c0_87] : memref<1x12x16x128xf32, #tpu.memory_space<vmem>>, vector<1x1x16x128xf32>
    %277 = vector.shape_cast %276 : vector<1x1x16x128xf32> to vector<16x128xf32>
    %278 = vector.shape_cast %275 : vector<16x128xf32> to vector<1x1x16x128xf32>
    tpu.vector_store %arg4[%c0_84, %c4_85, %c0_86, %c0_87], %278 {strides = array<i32>} : memref<1x12x16x128xf32, #tpu.memory_space<vmem>>, vector<1x1x16x128xf32>,
    %c0_88 = arith.constant 0 : index
    %c5 = arith.constant 5 : index
    %c0_89 = arith.constant 0 : index
    %c0_90 = arith.constant 0 : index
    %279 = vector.load %arg2[%c0_88, %c5, %c0_89, %c0_90] : memref<1x12x16x1024xbf16, #tpu.memory_space<vmem>>, vector<1x1x16x1024xbf16>
    %280 = vector.shape_cast %279 : vector<1x1x16x1024xbf16> to vector<16x1024xbf16>
    %cst_91 = arith.constant dense<0.000000e+00> : vector<16x1024xf32>
    %281 = tpu.matmul %32, %280, %cst_91 {dimension_numbers = #tpu.dot_dimension_numbers<[1], [0], [0], [1], [0, 0, 1, 1], [], []>} : vector<16x16xbf16>, vector<16x1024xbf16>, vector<16x1024xf32> -> vector<16x1024xf32>
    %282 = vector.extract_strided_slice %281 {offsets = [0, 0], sizes = [16, 128], strides = [1, 1]} : vector<16x1024xf32> to vector<16x128xf32>
    %283 = arith.mulf %282, %56 : vector<16x128xf32>
    %284 = vector.extract_strided_slice %281 {offsets = [0, 128], sizes = [16, 128], strides = [1, 1]} : vector<16x1024xf32> to vector<16x128xf32>
    %285 = arith.mulf %284, %67 : vector<16x128xf32>
    %286 = arith.addf %283, %285 : vector<16x128xf32>
    %287 = vector.extract_strided_slice %281 {offsets = [0, 256], sizes = [16, 128], strides = [1, 1]} : vector<16x1024xf32> to vector<16x128xf32>
    %288 = arith.mulf %287, %78 : vector<16x128xf32>
    %289 = arith.addf %286, %288 : vector<16x128xf32>
    %290 = vector.extract_strided_slice %281 {offsets = [0, 384], sizes = [16, 128], strides = [1, 1]} : vector<16x1024xf32> to vector<16x128xf32>
    %291 = arith.mulf %290, %89 : vector<16x128xf32>
    %292 = arith.addf %289, %291 : vector<16x128xf32>
    %293 = vector.extract_strided_slice %281 {offsets = [0, 512], sizes = [16, 128], strides = [1, 1]} : vector<16x1024xf32> to vector<16x128xf32>
    %294 = arith.mulf %293, %100 : vector<16x128xf32>
    %295 = arith.addf %292, %294 : vector<16x128xf32>
    %296 = vector.extract_strided_slice %281 {offsets = [0, 640], sizes = [16, 128], strides = [1, 1]} : vector<16x1024xf32> to vector<16x128xf32>
    %297 = arith.mulf %296, %111 : vector<16x128xf32>
    %298 = arith.addf %295, %297 : vector<16x128xf32>
    %299 = vector.extract_strided_slice %281 {offsets = [0, 768], sizes = [16, 128], strides = [1, 1]} : vector<16x1024xf32> to vector<16x128xf32>
    %300 = arith.mulf %299, %122 : vector<16x128xf32>
    %301 = arith.addf %298, %300 : vector<16x128xf32>
    %302 = vector.extract_strided_slice %281 {offsets = [0, 896], sizes = [16, 128], strides = [1, 1]} : vector<16x1024xf32> to vector<16x128xf32>
    %303 = arith.mulf %302, %133 : vector<16x128xf32>
    %304 = arith.addf %301, %303 : vector<16x128xf32>
    %c0_92 = arith.constant 0 : index
    %c5_93 = arith.constant 5 : index
    %c0_94 = arith.constant 0 : index
    %c0_95 = arith.constant 0 : index
    %305 = vector.load %arg4[%c0_92, %c5_93, %c0_94, %c0_95] : memref<1x12x16x128xf32, #tpu.memory_space<vmem>>, vector<1x1x16x128xf32>
    %306 = vector.shape_cast %305 : vector<1x1x16x128xf32> to vector<16x128xf32>
    %307 = vector.shape_cast %304 : vector<16x128xf32> to vector<1x1x16x128xf32>
    tpu.vector_store %arg4[%c0_92, %c5_93, %c0_94, %c0_95], %307 {strides = array<i32>} : memref<1x12x16x128xf32, #tpu.memory_space<vmem>>, vector<1x1x16x128xf32>,
    %c0_96 = arith.constant 0 : index
    %c6 = arith.constant 6 : index
    %c0_97 = arith.constant 0 : index
    %c0_98 = arith.constant 0 : index
    %308 = vector.load %arg2[%c0_96, %c6, %c0_97, %c0_98] : memref<1x12x16x1024xbf16, #tpu.memory_space<vmem>>, vector<1x1x16x1024xbf16>
    %309 = vector.shape_cast %308 : vector<1x1x16x1024xbf16> to vector<16x1024xbf16>
    %cst_99 = arith.constant dense<0.000000e+00> : vector<16x1024xf32>
    %310 = tpu.matmul %32, %309, %cst_99 {dimension_numbers = #tpu.dot_dimension_numbers<[1], [0], [0], [1], [0, 0, 1, 1], [], []>} : vector<16x16xbf16>, vector<16x1024xbf16>, vector<16x1024xf32> -> vector<16x1024xf32>
    %311 = vector.extract_strided_slice %310 {offsets = [0, 0], sizes = [16, 128], strides = [1, 1]} : vector<16x1024xf32> to vector<16x128xf32>
    %312 = arith.mulf %311, %56 : vector<16x128xf32>
    %313 = vector.extract_strided_slice %310 {offsets = [0, 128], sizes = [16, 128], strides = [1, 1]} : vector<16x1024xf32> to vector<16x128xf32>
    %314 = arith.mulf %313, %67 : vector<16x128xf32>
    %315 = arith.addf %312, %314 : vector<16x128xf32>
    %316 = vector.extract_strided_slice %310 {offsets = [0, 256], sizes = [16, 128], strides = [1, 1]} : vector<16x1024xf32> to vector<16x128xf32>
    %317 = arith.mulf %316, %78 : vector<16x128xf32>
    %318 = arith.addf %315, %317 : vector<16x128xf32>
    %319 = vector.extract_strided_slice %310 {offsets = [0, 384], sizes = [16, 128], strides = [1, 1]} : vector<16x1024xf32> to vector<16x128xf32>
    %320 = arith.mulf %319, %89 : vector<16x128xf32>
    %321 = arith.addf %318, %320 : vector<16x128xf32>
    %322 = vector.extract_strided_slice %310 {offsets = [0, 512], sizes = [16, 128], strides = [1, 1]} : vector<16x1024xf32> to vector<16x128xf32>
    %323 = arith.mulf %322, %100 : vector<16x128xf32>
    %324 = arith.addf %321, %323 : vector<16x128xf32>
    %325 = vector.extract_strided_slice %310 {offsets = [0, 640], sizes = [16, 128], strides = [1, 1]} : vector<16x1024xf32> to vector<16x128xf32>
    %326 = arith.mulf %325, %111 : vector<16x128xf32>
    %327 = arith.addf %324, %326 : vector<16x128xf32>
    %328 = vector.extract_strided_slice %310 {offsets = [0, 768], sizes = [16, 128], strides = [1, 1]} : vector<16x1024xf32> to vector<16x128xf32>
    %329 = arith.mulf %328, %122 : vector<16x128xf32>
    %330 = arith.addf %327, %329 : vector<16x128xf32>
    %331 = vector.extract_strided_slice %310 {offsets = [0, 896], sizes = [16, 128], strides = [1, 1]} : vector<16x1024xf32> to vector<16x128xf32>
    %332 = arith.mulf %331, %133 : vector<16x128xf32>
    %333 = arith.addf %330, %332 : vector<16x128xf32>
    %c0_100 = arith.constant 0 : index
    %c6_101 = arith.constant 6 : index
    %c0_102 = arith.constant 0 : index
    %c0_103 = arith.constant 0 : index
    %334 = vector.load %arg4[%c0_100, %c6_101, %c0_102, %c0_103] : memref<1x12x16x128xf32, #tpu.memory_space<vmem>>, vector<1x1x16x128xf32>
    %335 = vector.shape_cast %334 : vector<1x1x16x128xf32> to vector<16x128xf32>
    %336 = vector.shape_cast %333 : vector<16x128xf32> to vector<1x1x16x128xf32>
    tpu.vector_store %arg4[%c0_100, %c6_101, %c0_102, %c0_103], %336 {strides = array<i32>} : memref<1x12x16x128xf32, #tpu.memory_space<vmem>>, vector<1x1x16x128xf32>,
    %c0_104 = arith.constant 0 : index
    %c7 = arith.constant 7 : index
    %c0_105 = arith.constant 0 : index
    %c0_106 = arith.constant 0 : index
    %337 = vector.load %arg2[%c0_104, %c7, %c0_105, %c0_106] : memref<1x12x16x1024xbf16, #tpu.memory_space<vmem>>, vector<1x1x16x1024xbf16>
    %338 = vector.shape_cast %337 : vector<1x1x16x1024xbf16> to vector<16x1024xbf16>
    %cst_107 = arith.constant dense<0.000000e+00> : vector<16x1024xf32>
    %339 = tpu.matmul %32, %338, %cst_107 {dimension_numbers = #tpu.dot_dimension_numbers<[1], [0], [0], [1], [0, 0, 1, 1], [], []>} : vector<16x16xbf16>, vector<16x1024xbf16>, vector<16x1024xf32> -> vector<16x1024xf32>
    %340 = vector.extract_strided_slice %339 {offsets = [0, 0], sizes = [16, 128], strides = [1, 1]} : vector<16x1024xf32> to vector<16x128xf32>
    %341 = arith.mulf %340, %56 : vector<16x128xf32>
    %342 = vector.extract_strided_slice %339 {offsets = [0, 128], sizes = [16, 128], strides = [1, 1]} : vector<16x1024xf32> to vector<16x128xf32>
    %343 = arith.mulf %342, %67 : vector<16x128xf32>
    %344 = arith.addf %341, %343 : vector<16x128xf32>
    %345 = vector.extract_strided_slice %339 {offsets = [0, 256], sizes = [16, 128], strides = [1, 1]} : vector<16x1024xf32> to vector<16x128xf32>
    %346 = arith.mulf %345, %78 : vector<16x128xf32>
    %347 = arith.addf %344, %346 : vector<16x128xf32>
    %348 = vector.extract_strided_slice %339 {offsets = [0, 384], sizes = [16, 128], strides = [1, 1]} : vector<16x1024xf32> to vector<16x128xf32>
    %349 = arith.mulf %348, %89 : vector<16x128xf32>
    %350 = arith.addf %347, %349 : vector<16x128xf32>
    %351 = vector.extract_strided_slice %339 {offsets = [0, 512], sizes = [16, 128], strides = [1, 1]} : vector<16x1024xf32> to vector<16x128xf32>
    %352 = arith.mulf %351, %100 : vector<16x128xf32>
    %353 = arith.addf %350, %352 : vector<16x128xf32>
    %354 = vector.extract_strided_slice %339 {offsets = [0, 640], sizes = [16, 128], strides = [1, 1]} : vector<16x1024xf32> to vector<16x128xf32>
    %355 = arith.mulf %354, %111 : vector<16x128xf32>
    %356 = arith.addf %353, %355 : vector<16x128xf32>
    %357 = vector.extract_strided_slice %339 {offsets = [0, 768], sizes = [16, 128], strides = [1, 1]} : vector<16x1024xf32> to vector<16x128xf32>
    %358 = arith.mulf %357, %122 : vector<16x128xf32>
    %359 = arith.addf %356, %358 : vector<16x128xf32>
    %360 = vector.extract_strided_slice %339 {offsets = [0, 896], sizes = [16, 128], strides = [1, 1]} : vector<16x1024xf32> to vector<16x128xf32>
    %361 = arith.mulf %360, %133 : vector<16x128xf32>
    %362 = arith.addf %359, %361 : vector<16x128xf32>
    %c0_108 = arith.constant 0 : index
    %c7_109 = arith.constant 7 : index
    %c0_110 = arith.constant 0 : index
    %c0_111 = arith.constant 0 : index
    %363 = vector.load %arg4[%c0_108, %c7_109, %c0_110, %c0_111] : memref<1x12x16x128xf32, #tpu.memory_space<vmem>>, vector<1x1x16x128xf32>
    %364 = vector.shape_cast %363 : vector<1x1x16x128xf32> to vector<16x128xf32>
    %365 = vector.shape_cast %362 : vector<16x128xf32> to vector<1x1x16x128xf32>
    tpu.vector_store %arg4[%c0_108, %c7_109, %c0_110, %c0_111], %365 {strides = array<i32>} : memref<1x12x16x128xf32, #tpu.memory_space<vmem>>, vector<1x1x16x128xf32>,
    %c0_112 = arith.constant 0 : index
    %c8 = arith.constant 8 : index
    %c0_113 = arith.constant 0 : index
    %c0_114 = arith.constant 0 : index
    %366 = vector.load %arg2[%c0_112, %c8, %c0_113, %c0_114] : memref<1x12x16x1024xbf16, #tpu.memory_space<vmem>>, vector<1x1x16x1024xbf16>
    %367 = vector.shape_cast %366 : vector<1x1x16x1024xbf16> to vector<16x1024xbf16>
    %cst_115 = arith.constant dense<0.000000e+00> : vector<16x1024xf32>
    %368 = tpu.matmul %32, %367, %cst_115 {dimension_numbers = #tpu.dot_dimension_numbers<[1], [0], [0], [1], [0, 0, 1, 1], [], []>} : vector<16x16xbf16>, vector<16x1024xbf16>, vector<16x1024xf32> -> vector<16x1024xf32>
    %369 = vector.extract_strided_slice %368 {offsets = [0, 0], sizes = [16, 128], strides = [1, 1]} : vector<16x1024xf32> to vector<16x128xf32>
    %370 = arith.mulf %369, %56 : vector<16x128xf32>
    %371 = vector.extract_strided_slice %368 {offsets = [0, 128], sizes = [16, 128], strides = [1, 1]} : vector<16x1024xf32> to vector<16x128xf32>
    %372 = arith.mulf %371, %67 : vector<16x128xf32>
    %373 = arith.addf %370, %372 : vector<16x128xf32>
    %374 = vector.extract_strided_slice %368 {offsets = [0, 256], sizes = [16, 128], strides = [1, 1]} : vector<16x1024xf32> to vector<16x128xf32>
    %375 = arith.mulf %374, %78 : vector<16x128xf32>
    %376 = arith.addf %373, %375 : vector<16x128xf32>
    %377 = vector.extract_strided_slice %368 {offsets = [0, 384], sizes = [16, 128], strides = [1, 1]} : vector<16x1024xf32> to vector<16x128xf32>
    %378 = arith.mulf %377, %89 : vector<16x128xf32>
    %379 = arith.addf %376, %378 : vector<16x128xf32>
    %380 = vector.extract_strided_slice %368 {offsets = [0, 512], sizes = [16, 128], strides = [1, 1]} : vector<16x1024xf32> to vector<16x128xf32>
    %381 = arith.mulf %380, %100 : vector<16x128xf32>
    %382 = arith.addf %379, %381 : vector<16x128xf32>
    %383 = vector.extract_strided_slice %368 {offsets = [0, 640], sizes = [16, 128], strides = [1, 1]} : vector<16x1024xf32> to vector<16x128xf32>
    %384 = arith.mulf %383, %111 : vector<16x128xf32>
    %385 = arith.addf %382, %384 : vector<16x128xf32>
    %386 = vector.extract_strided_slice %368 {offsets = [0, 768], sizes = [16, 128], strides = [1, 1]} : vector<16x1024xf32> to vector<16x128xf32>
    %387 = arith.mulf %386, %122 : vector<16x128xf32>
    %388 = arith.addf %385, %387 : vector<16x128xf32>
    %389 = vector.extract_strided_slice %368 {offsets = [0, 896], sizes = [16, 128], strides = [1, 1]} : vector<16x1024xf32> to vector<16x128xf32>
    %390 = arith.mulf %389, %133 : vector<16x128xf32>
    %391 = arith.addf %388, %390 : vector<16x128xf32>
    %c0_116 = arith.constant 0 : index
    %c8_117 = arith.constant 8 : index
    %c0_118 = arith.constant 0 : index
    %c0_119 = arith.constant 0 : index
    %392 = vector.load %arg4[%c0_116, %c8_117, %c0_118, %c0_119] : memref<1x12x16x128xf32, #tpu.memory_space<vmem>>, vector<1x1x16x128xf32>
    %393 = vector.shape_cast %392 : vector<1x1x16x128xf32> to vector<16x128xf32>
    %394 = vector.shape_cast %391 : vector<16x128xf32> to vector<1x1x16x128xf32>
    tpu.vector_store %arg4[%c0_116, %c8_117, %c0_118, %c0_119], %394 {strides = array<i32>} : memref<1x12x16x128xf32, #tpu.memory_space<vmem>>, vector<1x1x16x128xf32>,
    %c0_120 = arith.constant 0 : index
    %c9 = arith.constant 9 : index
    %c0_121 = arith.constant 0 : index
    %c0_122 = arith.constant 0 : index
    %395 = vector.load %arg2[%c0_120, %c9, %c0_121, %c0_122] : memref<1x12x16x1024xbf16, #tpu.memory_space<vmem>>, vector<1x1x16x1024xbf16>
    %396 = vector.shape_cast %395 : vector<1x1x16x1024xbf16> to vector<16x1024xbf16>
    %cst_123 = arith.constant dense<0.000000e+00> : vector<16x1024xf32>
    %397 = tpu.matmul %32, %396, %cst_123 {dimension_numbers = #tpu.dot_dimension_numbers<[1], [0], [0], [1], [0, 0, 1, 1], [], []>} : vector<16x16xbf16>, vector<16x1024xbf16>, vector<16x1024xf32> -> vector<16x1024xf32>
    %398 = vector.extract_strided_slice %397 {offsets = [0, 0], sizes = [16, 128], strides = [1, 1]} : vector<16x1024xf32> to vector<16x128xf32>
    %399 = arith.mulf %398, %56 : vector<16x128xf32>
    %400 = vector.extract_strided_slice %397 {offsets = [0, 128], sizes = [16, 128], strides = [1, 1]} : vector<16x1024xf32> to vector<16x128xf32>
    %401 = arith.mulf %400, %67 : vector<16x128xf32>
    %402 = arith.addf %399, %401 : vector<16x128xf32>
    %403 = vector.extract_strided_slice %397 {offsets = [0, 256], sizes = [16, 128], strides = [1, 1]} : vector<16x1024xf32> to vector<16x128xf32>
    %404 = arith.mulf %403, %78 : vector<16x128xf32>
    %405 = arith.addf %402, %404 : vector<16x128xf32>
    %406 = vector.extract_strided_slice %397 {offsets = [0, 384], sizes = [16, 128], strides = [1, 1]} : vector<16x1024xf32> to vector<16x128xf32>
    %407 = arith.mulf %406, %89 : vector<16x128xf32>
    %408 = arith.addf %405, %407 : vector<16x128xf32>
    %409 = vector.extract_strided_slice %397 {offsets = [0, 512], sizes = [16, 128], strides = [1, 1]} : vector<16x1024xf32> to vector<16x128xf32>
    %410 = arith.mulf %409, %100 : vector<16x128xf32>
    %411 = arith.addf %408, %410 : vector<16x128xf32>
    %412 = vector.extract_strided_slice %397 {offsets = [0, 640], sizes = [16, 128], strides = [1, 1]} : vector<16x1024xf32> to vector<16x128xf32>
    %413 = arith.mulf %412, %111 : vector<16x128xf32>
    %414 = arith.addf %411, %413 : vector<16x128xf32>
    %415 = vector.extract_strided_slice %397 {offsets = [0, 768], sizes = [16, 128], strides = [1, 1]} : vector<16x1024xf32> to vector<16x128xf32>
    %416 = arith.mulf %415, %122 : vector<16x128xf32>
    %417 = arith.addf %414, %416 : vector<16x128xf32>
    %418 = vector.extract_strided_slice %397 {offsets = [0, 896], sizes = [16, 128], strides = [1, 1]} : vector<16x1024xf32> to vector<16x128xf32>
    %419 = arith.mulf %418, %133 : vector<16x128xf32>
    %420 = arith.addf %417, %419 : vector<16x128xf32>
    %c0_124 = arith.constant 0 : index
    %c9_125 = arith.constant 9 : index
    %c0_126 = arith.constant 0 : index
    %c0_127 = arith.constant 0 : index
    %421 = vector.load %arg4[%c0_124, %c9_125, %c0_126, %c0_127] : memref<1x12x16x128xf32, #tpu.memory_space<vmem>>, vector<1x1x16x128xf32>
    %422 = vector.shape_cast %421 : vector<1x1x16x128xf32> to vector<16x128xf32>
    %423 = vector.shape_cast %420 : vector<16x128xf32> to vector<1x1x16x128xf32>
    tpu.vector_store %arg4[%c0_124, %c9_125, %c0_126, %c0_127], %423 {strides = array<i32>} : memref<1x12x16x128xf32, #tpu.memory_space<vmem>>, vector<1x1x16x128xf32>,
    %c0_128 = arith.constant 0 : index
    %c10 = arith.constant 10 : index
    %c0_129 = arith.constant 0 : index
    %c0_130 = arith.constant 0 : index
    %424 = vector.load %arg2[%c0_128, %c10, %c0_129, %c0_130] : memref<1x12x16x1024xbf16, #tpu.memory_space<vmem>>, vector<1x1x16x1024xbf16>
    %425 = vector.shape_cast %424 : vector<1x1x16x1024xbf16> to vector<16x1024xbf16>
    %cst_131 = arith.constant dense<0.000000e+00> : vector<16x1024xf32>
    %426 = tpu.matmul %32, %425, %cst_131 {dimension_numbers = #tpu.dot_dimension_numbers<[1], [0], [0], [1], [0, 0, 1, 1], [], []>} : vector<16x16xbf16>, vector<16x1024xbf16>, vector<16x1024xf32> -> vector<16x1024xf32>
    %427 = vector.extract_strided_slice %426 {offsets = [0, 0], sizes = [16, 128], strides = [1, 1]} : vector<16x1024xf32> to vector<16x128xf32>
    %428 = arith.mulf %427, %56 : vector<16x128xf32>
    %429 = vector.extract_strided_slice %426 {offsets = [0, 128], sizes = [16, 128], strides = [1, 1]} : vector<16x1024xf32> to vector<16x128xf32>
    %430 = arith.mulf %429, %67 : vector<16x128xf32>
    %431 = arith.addf %428, %430 : vector<16x128xf32>
    %432 = vector.extract_strided_slice %426 {offsets = [0, 256], sizes = [16, 128], strides = [1, 1]} : vector<16x1024xf32> to vector<16x128xf32>
    %433 = arith.mulf %432, %78 : vector<16x128xf32>
    %434 = arith.addf %431, %433 : vector<16x128xf32>
    %435 = vector.extract_strided_slice %426 {offsets = [0, 384], sizes = [16, 128], strides = [1, 1]} : vector<16x1024xf32> to vector<16x128xf32>
    %436 = arith.mulf %435, %89 : vector<16x128xf32>
    %437 = arith.addf %434, %436 : vector<16x128xf32>
    %438 = vector.extract_strided_slice %426 {offsets = [0, 512], sizes = [16, 128], strides = [1, 1]} : vector<16x1024xf32> to vector<16x128xf32>
    %439 = arith.mulf %438, %100 : vector<16x128xf32>
    %440 = arith.addf %437, %439 : vector<16x128xf32>
    %441 = vector.extract_strided_slice %426 {offsets = [0, 640], sizes = [16, 128], strides = [1, 1]} : vector<16x1024xf32> to vector<16x128xf32>
    %442 = arith.mulf %441, %111 : vector<16x128xf32>
    %443 = arith.addf %440, %442 : vector<16x128xf32>
    %444 = vector.extract_strided_slice %426 {offsets = [0, 768], sizes = [16, 128], strides = [1, 1]} : vector<16x1024xf32> to vector<16x128xf32>
    %445 = arith.mulf %444, %122 : vector<16x128xf32>
    %446 = arith.addf %443, %445 : vector<16x128xf32>
    %447 = vector.extract_strided_slice %426 {offsets = [0, 896], sizes = [16, 128], strides = [1, 1]} : vector<16x1024xf32> to vector<16x128xf32>
    %448 = arith.mulf %447, %133 : vector<16x128xf32>
    %449 = arith.addf %446, %448 : vector<16x128xf32>
    %c0_132 = arith.constant 0 : index
    %c10_133 = arith.constant 10 : index
    %c0_134 = arith.constant 0 : index
    %c0_135 = arith.constant 0 : index
    %450 = vector.load %arg4[%c0_132, %c10_133, %c0_134, %c0_135] : memref<1x12x16x128xf32, #tpu.memory_space<vmem>>, vector<1x1x16x128xf32>
    %451 = vector.shape_cast %450 : vector<1x1x16x128xf32> to vector<16x128xf32>
    %452 = vector.shape_cast %449 : vector<16x128xf32> to vector<1x1x16x128xf32>
    tpu.vector_store %arg4[%c0_132, %c10_133, %c0_134, %c0_135], %452 {strides = array<i32>} : memref<1x12x16x128xf32, #tpu.memory_space<vmem>>, vector<1x1x16x128xf32>,
    %c0_136 = arith.constant 0 : index
    %c11 = arith.constant 11 : index
    %c0_137 = arith.constant 0 : index
    %c0_138 = arith.constant 0 : index
    %453 = vector.load %arg2[%c0_136, %c11, %c0_137, %c0_138] : memref<1x12x16x1024xbf16, #tpu.memory_space<vmem>>, vector<1x1x16x1024xbf16>
    %454 = vector.shape_cast %453 : vector<1x1x16x1024xbf16> to vector<16x1024xbf16>
    %cst_139 = arith.constant dense<0.000000e+00> : vector<16x1024xf32>
    %455 = tpu.matmul %32, %454, %cst_139 {dimension_numbers = #tpu.dot_dimension_numbers<[1], [0], [0], [1], [0, 0, 1, 1], [], []>} : vector<16x16xbf16>, vector<16x1024xbf16>, vector<16x1024xf32> -> vector<16x1024xf32>
    %456 = vector.extract_strided_slice %455 {offsets = [0, 0], sizes = [16, 128], strides = [1, 1]} : vector<16x1024xf32> to vector<16x128xf32>
    %457 = arith.mulf %456, %56 : vector<16x128xf32>
    %458 = vector.extract_strided_slice %455 {offsets = [0, 128], sizes = [16, 128], strides = [1, 1]} : vector<16x1024xf32> to vector<16x128xf32>
    %459 = arith.mulf %458, %67 : vector<16x128xf32>
    %460 = arith.addf %457, %459 : vector<16x128xf32>
    %461 = vector.extract_strided_slice %455 {offsets = [0, 256], sizes = [16, 128], strides = [1, 1]} : vector<16x1024xf32> to vector<16x128xf32>
    %462 = arith.mulf %461, %78 : vector<16x128xf32>
    %463 = arith.addf %460, %462 : vector<16x128xf32>
    %464 = vector.extract_strided_slice %455 {offsets = [0, 384], sizes = [16, 128], strides = [1, 1]} : vector<16x1024xf32> to vector<16x128xf32>
    %465 = arith.mulf %464, %89 : vector<16x128xf32>
    %466 = arith.addf %463, %465 : vector<16x128xf32>
    %467 = vector.extract_strided_slice %455 {offsets = [0, 512], sizes = [16, 128], strides = [1, 1]} : vector<16x1024xf32> to vector<16x128xf32>
    %468 = arith.mulf %467, %100 : vector<16x128xf32>
    %469 = arith.addf %466, %468 : vector<16x128xf32>
    %470 = vector.extract_strided_slice %455 {offsets = [0, 640], sizes = [16, 128], strides = [1, 1]} : vector<16x1024xf32> to vector<16x128xf32>
    %471 = arith.mulf %470, %111 : vector<16x128xf32>
    %472 = arith.addf %469, %471 : vector<16x128xf32>
    %473 = vector.extract_strided_slice %455 {offsets = [0, 768], sizes = [16, 128], strides = [1, 1]} : vector<16x1024xf32> to vector<16x128xf32>
    %474 = arith.mulf %473, %122 : vector<16x128xf32>
    %475 = arith.addf %472, %474 : vector<16x128xf32>
    %476 = vector.extract_strided_slice %455 {offsets = [0, 896], sizes = [16, 128], strides = [1, 1]} : vector<16x1024xf32> to vector<16x128xf32>
    %477 = arith.mulf %476, %133 : vector<16x128xf32>
    %478 = arith.addf %475, %477 : vector<16x128xf32>
    %c0_140 = arith.constant 0 : index
    %c11_141 = arith.constant 11 : index
    %c0_142 = arith.constant 0 : index
    %c0_143 = arith.constant 0 : index
    %479 = vector.load %arg4[%c0_140, %c11_141, %c0_142, %c0_143] : memref<1x12x16x128xf32, #tpu.memory_space<vmem>>, vector<1x1x16x128xf32>
    %480 = vector.shape_cast %479 : vector<1x1x16x128xf32> to vector<16x128xf32>
    %481 = vector.shape_cast %478 : vector<16x128xf32> to vector<1x1x16x128xf32>
    tpu.vector_store %arg4[%c0_140, %c11_141, %c0_142, %c0_143], %481 {strides = array<i32>} : memref<1x12x16x128xf32, #tpu.memory_space<vmem>>, vector<1x1x16x128xf32>,
    return
  }
  func.func @transform_0(%arg0: i32, %arg1: i32) -> (i32, i32, i32, i32) {
    %c0_i32 = arith.constant 0 : i32
    %c0_i32_0 = arith.constant 0 : i32
    %c0_i32_1 = arith.constant 0 : i32
    %c0_i32_2 = arith.constant 0 : i32
    return %arg0, %c0_i32, %c0_i32_0, %c0_i32_1 : i32, i32, i32, i32
  }
  func.func @transform_1(%arg0: i32, %arg1: i32) -> (i32, i32, i32, i32) {
    %c0_i32 = arith.constant 0 : i32
    %c0_i32_0 = arith.constant 0 : i32
    %c0_i32_1 = arith.constant 0 : i32
    return %arg0, %c0_i32, %arg1, %c0_i32_0 : i32, i32, i32, i32
  }
  func.func @transform_2(%arg0: i32, %arg1: i32) -> (i32, i32, i32, i32) {
    %c0_i32 = arith.constant 0 : i32
    %c0_i32_0 = arith.constant 0 : i32
    %c0_i32_1 = arith.constant 0 : i32
    return %arg0, %c0_i32, %arg1, %c0_i32_0 : i32, i32, i32, i32
  }
}

</mosaic_0001>

<bundles_post_ra>
// kernel: hdrnet_slice.1
= control target key start
LH: loop header
LB: loop body
LE: loop exit
PB: predicated region body
PF: predicated region fallthrough
CT: control target
= control target key end

     0   :  { %7 = vsyncpa [#allocation3], 0  ;;  %s4487_s0 = inlined_call_operand.vmem [shape: bf16[2,12,16,1024], index: 0, kind: input, shape index: {}]   ;;  %s4488_s1 = inlined_call_operand.vmem [shape: f32[2,1,16,128], index: 1, kind: input, shape index: {}]   ;;  %s4489_s2 = inlined_call_operand.hbm [shape: f32[2,12,16,128], index: 2, kind: output, shape index: {}]  }
   0x1   :  { %9 = vsyncpa [#allocation3 + $0x1], 0  ;;  %s3630_s9 = smov 0   ;;  %s3632_s10 = smov 0  }
   0x2   :  { %s3634_s11 = smov 0   ;;  %s3636_s12 = smov 0  }
   0x3   :  { %s3638_s13 = smov 0   ;;  %s3640_s14 = smov 0  }
   0x4 LB: > { %s2761_s15 = sadd.s32 4294967295, %s3611_s14   ;;  %s2762_s16 = sadd.s32 4294967294, %s3611_s14   ;;  %s3611_s14 = sphi %s3640_s14, %s15_s14   ;;  %s3607_s13 = sphi %s3638_s13, %s4496_s13   ;;  %s3603_s12 = sphi %s3636_s12, %s4495_s12   ;;  %s3599_s11 = sphi %s3634_s11, %s4494_s11   ;;  %s3595_s10 = sphi %s3632_s10, %s4493_s10   ;;  %s3591_s9 = sphi %s3630_s9, %s4492_s9  }
   0x5   : > { %s27_s17 = sadd.s32 1, %s3607_s13  ;;  %s90_s18 = sadd.s32 1, %s3599_s11 }
   0x6   : > { %p29_p0 = scmp.ge.s32.totalorder %s27_s17, 2  ;;  %p100_p1 = scmp.ne.s32.totalorder %s3599_s11, %s3595_s10 }
   0x7   : > { %p101_p2 = scmp.eq.s32.totalorder %s2761_s15, 1  ;;  %p106_p3 = scmp.ne.s32.totalorder %s3595_s10, %s3591_s9 }
   0x8   : > { %s4498_s17 = smov (%p29_p0, %s27_s17), 0  ;;  %p107_p5 = scmp.eq.s32.totalorder %s2762_s16, 1 }
   0x9   : > { %p3670_p4 = por %p101_p2, %p100_p1  ;;  %s85_s20 = ssub.s32 %s3607_s13, %s4498_s17 }
   0xa   : > { %p2765_p6 = scmp.ge.s32.totalorder %s3611_s14, 1  ;;  %p88_p7 = scmp.eq.s32.totalorder %s85_s20, 0 }
   0xb   : > { %p3677_p8 = por %p107_p5, %p106_p3  ;;  %p146_p9 = scmp.lt.s32.totalorder %s3611_s14, 3 }
   0xc   : > { %s3683_s22 = scalar_select %p88_p7, %s3599_s11, %s90_s18  }
   0xd   : > { %p147_p10 = pnand %p2765_p6, %p146_p9 }
   0xe   : > { %p177_p11 = scmp.lt.s32.totalorder (!%p147_p10), %s3603_s12, 1  ;;  %s174_s4 = sand.u32 (!%p147_p10), 1, %s3595_s10  }
   0xf   : > { %150 = sbr.rel (%p147_p10) target bundleno = 571 (0x23b), region = 28  ;;  %s2653_s20 = scalar_lea.sflag (!%p147_p10), [#allocation3], %s174_s4 }
  0x10   : > { %s3465_s5 = smul.u32 (!%p147_p10), 192, %s174_s4 }
  0x11   : > { %s3475_s7 = smul.u32 (!%p147_p10), 192, %s3603_s12 }
  0x12   : > { %s4035_s6 = scalar_lea.vmem (!%p147_p10), [#allocation2], %s3465_s5 }
  0x13   : > { %s2666_s16 = scalar_lea.hbm (!%p147_p10), %s4489_s2, %s3475_s7 }
  0x14   : > { %v195_v0 = vlaneseq  ;;  %s3687_s23 = scalar_select %p177_p11, %s3603_s12, 1  ;;  %vm370_vm4 = vcmask 130048  }
  0x15   : > { %s2667_s12 = sshll.u32 %s4035_s6, 4  ;;  %s2669_s18 = sshll.u32 %s2666_s16, 4  ;;  %s2668_s12 = int_to_ptr.vmem [resolvable:$true] %s2667_s12  ;;  %s2670_s18 = int_to_ptr.hbm [resolvable:$true] %s2669_s18 }
  0x16   : > { %v198_v1 = vshrl.u32 %v195_v0, 7  ;;  %s3466_s24 = smul.u32 768, %s3687_s23  ;;  %v196_v41 = vand.u32 127, %v195_v0  ;;  %s3368_s28 = sshll.u32 %s3687_s23, 4 }
  0x17   : > { %s190_s3 = scalar_lea.vmem %s4488_s1, %s3368_s28  ;;  %s3547_s23 = sshra.s32 %s2670_s18, 4  ;;  %s3548_s23 = int_to_ptr.hbm [resolvable:$true] %s3547_s23 }
  0x18   : > { %v199_v2 = vadd.s32 8, %v198_v1  ;;  %v203_v3 = vcvt.s32.f32 %v198_v1  ;;  %s3693_s27 = scalar_lea.vmem %s4487_s0, %s3466_s24  ;;  %s3549_s24 = scalar_lea.hbm %s3548_s23, 192 }
  0x19   : > { %v2777_v6 = vld [vmem:[%s3693_s27] sm:$0xf]  ;;  %v3369_v8 = vld [vmem:[%s3693_s27 + $0x4] sm:$0xf]  ;;  %v2785_v11 = vld [vmem:[%s3693_s27 + $0x8] sm:$0xf]  ;;  %p3550_p12 = scmp.ne.s32.totalorder %s3548_s23, %s3549_s24  ;;  %p3554_p1 = scmp.lt.s32.totalorder %s3548_s23, %s4489_s2 }
  0x1a   : > { %v204_v4 = vcvt.s32.f32 %v199_v2  ;;  %v205_v5 = vmul.f32 0.13333334, %v203_v3  ;;  %v3373_v7 = vld [vmem:[%s3693_s27 + $0x1c] sm:$0xf0]  ;;  %v2779_v10 = vld [vmem:[%s3693_s27 + $0x20] sm:$0xf0] }
  0x1b   : > { %v2778_v9 = vor.u32 %v3373_v7, %v2777_v6  ;;  %v3374_v12 = vld [vmem:[%s3693_s27 + $0x24] sm:$0xf0]  ;;  %v2782_v13 = vor.u32 %v3369_v8, %v2779_v10  ;;  %v3370_v15 = vld [vmem:[%s3693_s27 + $0xc] sm:$0xf]  ;;  %v2801_v20 = vld [vmem:[%s3693_s27 + $0x18] sm:$0xf]  ;;  %p3551_p13 = pnand %p3550_p12, %p3670_p4 }
  0x1c   : > { %v2786_v14 = vor.u32 %v3374_v12, %v2785_v11  ;;  %v2787_v16 = vld [vmem:[%s3693_s27 + $0x28] sm:$0xf0]  ;;  %v206_v17 = vmul.f32 0.13333334, %v204_v4  ;;  %v2769_v19 = vadd.f32 -1.0, %v205_v5 }
  0x1d   : > { %381 = vmatpush.bf16.msra.mxu0 %v2778_v9  ;;  %v2790_v18 = vor.u32 %v3370_v15, %v2787_v16  ;;  %v3376_v21 = vld [vmem:[%s3693_s27 + $0x34] sm:$0xf0]  ;;  %395 = vmatpush.bf16.msra.mxu1 %v2782_v13  ;;  %v2793_v24 = vld [vmem:[%s3693_s27 + $0x10] sm:$0xf]  ;;  %v3372_v28 = vld [vmem:[%s3693_s27 + $0x1c] sm:$0xf]  ;;  %p3552_p0 = pneg %p3551_p13 }
  0x1e   : > { %409 = vmatpush.bf16.msra.mxu2 %v2786_v14  ;;  %v2770_v22 = vadd.f32 -1.0, %v206_v17  ;;  %v2802_v23 = vor.u32 %v3376_v21, %v2801_v20  ;;  %v3375_v25 = vld [vmem:[%s3693_s27 + $0x2c] sm:$0xf0]  ;;  %v209_v26 = vadd.f32 1.0, %v2769_v19  ;;  %v2803_v29 = vld [vmem:[%s3693_s27 + $0x38] sm:$0xf0] }
  0x1f   : > { %423 = vmatpush.bf16.msra.mxu3 %v2790_v18  ;;  %v2794_v27 = vor.u32 %v3375_v25, %v2793_v24  ;;  %v2806_v31 = vor.u32 %v3372_v28, %v2803_v29  ;;  %v3371_v32 = vld [vmem:[%s3693_s27 + $0x14] sm:$0xf]  ;;  %v2833_v53 = vld [vmem:[%s3693_s27 + $0x48] sm:$0xf]  ;;  %v2825_v57 = vld [vmem:[%s3693_s27 + $0x40] sm:$0xf] }
  0x20   : > { %v210_v30 = vadd.f32 1.0, %v2770_v22  ;;  %v2795_v33 = vld [vmem:[%s3693_s27 + $0x30] sm:$0xf0]  ;;  %v211_v34 = vmul.f32 16.0, %v209_v26  ;;  %v3382_v56 = vld [vmem:[%s3693_s27 + $0x64] sm:$0xf0] }
  0x21   : > { %437 = vmatpush.bf16.msrb.mxu0 %v2794_v27  ;;  %v2798_v35 = vor.u32 %v3371_v32, %v2795_v33  ;;  %v3381_v60 = vld [vmem:[%s3693_s27 + $0x5c] sm:$0xf0]  ;;  %v3378_v61 = vld [vmem:[%s3693_s27 + $0x4c] sm:$0xf]  ;;  %v3377_v0 = vld [vmem:[%s3693_s27 + $0x44] sm:$0xf]  ;;  %v2834_v3 = vor.u32 %v3382_v56, %v2833_v53 }
  0x22   : > { %465 = vmatpush.bf16.msrb.mxu2 %v2802_v23  ;;  %v212_v36 = vmul.f32 16.0, %v210_v30  ;;  %v2771_v37 = vadd.f32 -1.0, %v211_v34  ;;  %v2835_v63 = vld [vmem:[%s3693_s27 + $0x68] sm:$0xf0]  ;;  %v2827_v1 = vld [vmem:[%s3693_s27 + $0x60] sm:$0xf0]  ;;  %v2826_v4 = vor.u32 %v3381_v60, %v2825_v57 }
  0x23   : > { %479 = vmatpush.bf16.msrb.mxu3 %v2806_v31  ;;  %451 = vmatpush.bf16.msrb.mxu1 %v2798_v35  ;;  %v2838_v5 = vor.u32 %v3378_v61, %v2835_v63  ;;  %v2830_v6 = vor.u32 %v3377_v0, %v2827_v1  ;;  %v2849_v7 = vld [vmem:[%s3693_s27 + $0x58] sm:$0xf]  ;;  %v2841_v9 = vld [vmem:[%s3693_s27 + $0x50] sm:$0xf]  ;;  %v3380_v11 = vld [vmem:[%s3693_s27 + $0x5c] sm:$0xf] }
  0x24   : > { %v2772_v38 = vadd.f32 -1.0, %v212_v36  ;;  %v215_v39 = vmul.f32 0.5, %v2771_v37  ;;  %v3384_v8 = vld [vmem:[%s3693_s27 + $0x74] sm:$0xf0]  ;;  %v3383_v10 = vld [vmem:[%s3693_s27 + $0x6c] sm:$0xf0] }
  0x25   : > { %v2851_v12 = vld [vmem:[%s3693_s27 + $0x78] sm:$0xf0]  ;;  %v3379_v13 = vld [vmem:[%s3693_s27 + $0x54] sm:$0xf]  ;;  %v2850_v15 = vor.u32 %v3384_v8, %v2849_v7  ;;  %v2842_v16 = vor.u32 %v3383_v10, %v2841_v9  ;;  %v2883_v19 = vld [vmem:[%s3693_s27 + $0x88] sm:$0xf] }
  0x26   : > { %v216_v40 = vmul.f32 0.5, %v2772_v38  ;;  %v217_v42 = vfloor.f32 %v215_v39  ;;  %v2843_v14 = vld [vmem:[%s3693_s27 + $0x70] sm:$0xf0]  ;;  %v2854_v17 = vor.u32 %v3380_v11, %v2851_v12  ;;  %v3390_v20 = vld [vmem:[%s3693_s27 + $0xa4] sm:$0xf0] }
  0x27   : > { %v2846_v18 = vor.u32 %v3379_v13, %v2843_v14  ;;  %v2875_v21 = vld [vmem:[%s3693_s27 + $0x80] sm:$0xf]  ;;  %v3386_v23 = vld [vmem:[%s3693_s27 + $0x8c] sm:$0xf]  ;;  %v3385_v25 = vld [vmem:[%s3693_s27 + $0x84] sm:$0xf]  ;;  %v2884_v27 = vor.u32 %v3390_v20, %v2883_v19 }
  0x28   : > { %v218_v43 = vfloor.f32 %v216_v40  ;;  %v219_v44 = vsub.f32 %v215_v39, %v217_v42  ;;  %v3468_v45 = vcvt.f32.s32 %v217_v42  ;;  %v3389_v22 = vld [vmem:[%s3693_s27 + $0x9c] sm:$0xf0]  ;;  %v2885_v24 = vld [vmem:[%s3693_s27 + $0xa8] sm:$0xf0]  ;;  %v2877_v26 = vld [vmem:[%s3693_s27 + $0xa0] sm:$0xf0] }
  0x29   : > { %v2876_v28 = vor.u32 %v3389_v22, %v2875_v21  ;;  %v2888_v29 = vor.u32 %v3386_v23, %v2885_v24  ;;  %v2880_v30 = vor.u32 %v3385_v25, %v2877_v26  ;;  %v2899_v31 = vld [vmem:[%s3693_s27 + $0x98] sm:$0xf]  ;;  %v2891_v33 = vld [vmem:[%s3693_s27 + $0x90] sm:$0xf]  ;;  %v3388_v35 = vld [vmem:[%s3693_s27 + $0x9c] sm:$0xf] }
  0x2a   : > { %v220_v46 = vsub.f32 %v216_v40, %v218_v43  ;;  %v3470_v47 = vcvt.f32.s32 %v218_v43  ;;  %vm223_vm0 = vcmp.eq.s32.totalorder %v196_v41, %v3468_v45  ;;  %v225_v48 = vsub.f32 1.0, %v219_v44  ;;  %v3392_v32 = vld [vmem:[%s3693_s27 + $0xb4] sm:$0xf0]  ;;  %v3391_v34 = vld [vmem:[%s3693_s27 + $0xac] sm:$0xf0]  ;;  %v238_v14 = vld [vmem:[%s190_s3] sm:$0xff] }
  0x2b   : > { %v229_v49 = vadd.s32 1, %v3468_v45  ;;  %v2901_v36 = vld [vmem:[%s3693_s27 + $0xb8] sm:$0xf0]  ;;  %v3387_v37 = vld [vmem:[%s3693_s27 + $0x94] sm:$0xf]  ;;  %v2900_v39 = vor.u32 %v3392_v32, %v2899_v31  ;;  %v2892_v40 = vor.u32 %v3391_v34, %v2891_v33 }
  0x2c   : > { %vm224_vm1 = vcmp.eq.s32.totalorder %v196_v41, %v3470_v47  ;;  %v226_v50 = vsub.f32 1.0, %v220_v46  ;;  %v230_v51 = vadd.s32 1, %v3470_v47  ;;  %v227_v52 = vsel %vm223_vm0, %v225_v48, 0.0  ;;  %v2893_v38 = vld [vmem:[%s3693_s27 + $0xb0] sm:$0xf0] }
  0x2d   : > { %vm231_vm2 = vcmp.eq.s32.totalorder %v196_v41, %v229_v49  ;;  %v2896_v42 = vor.u32 %v3387_v37, %v2893_v38  ;;  %v2933_v43 = vld [vmem:[%s3693_s27 + $0xc8] sm:$0xf]  ;;  %v2925_v45 = vld [vmem:[%s3693_s27 + $0xc0] sm:$0xf]  ;;  %v3394_v47 = vld [vmem:[%s3693_s27 + $0xcc] sm:$0xf] }
  0x2e   : > { %v228_v54 = vsel %vm224_vm1, %v226_v50, 0.0  ;;  %vm232_vm3 = vcmp.eq.s32.totalorder %v196_v41, %v230_v51  ;;  %v233_v55 = vsel %vm231_vm2, %v219_v44, 0.0  ;;  %v2904_v41 = vor.u32 %v3388_v35, %v2901_v36  ;;  %v3398_v44 = vld [vmem:[%s3693_s27 + $0xe4] sm:$0xf0]  ;;  %v2935_v48 = vld [vmem:[%s3693_s27 + $0xe8] sm:$0xf0] }
  0x2f   : > { %v234_v58 = vsel %vm232_vm3, %v220_v46, 0.0  ;;  %v235_v59 = vadd.f32 %v233_v55, %v227_v52  ;;  %v3397_v46 = vld [vmem:[%s3693_s27 + $0xdc] sm:$0xf0]  ;;  %v3393_v49 = vld [vmem:[%s3693_s27 + $0xc4] sm:$0xf]  ;;  %v2934_v51 = vor.u32 %v3398_v44, %v2933_v43  ;;  %v2938_v53 = vor.u32 %v3394_v47, %v2935_v48 }
  0x30   : > { %v236_v62 = vadd.f32 %v234_v58, %v228_v54  ;;  %v2927_v50 = vld [vmem:[%s3693_s27 + $0xe0] sm:$0xf0]  ;;  %v2926_v52 = vor.u32 %v3397_v46, %v2925_v45  ;;  %v2949_v55 = vld [vmem:[%s3693_s27 + $0xd8] sm:$0xf]  ;;  %v2941_v57 = vld [vmem:[%s3693_s27 + $0xd0] sm:$0xf] }
  0x31   : > { %v2930_v54 = vor.u32 %v3393_v49, %v2927_v50  ;;  %v3400_v56 = vld [vmem:[%s3693_s27 + $0xf4] sm:$0xf0]  ;;  %v3399_v58 = vld [vmem:[%s3693_s27 + $0xec] sm:$0xf0]  ;;  %v2951_v60 = vld [vmem:[%s3693_s27 + $0xf8] sm:$0xf0] }
  0x32   : > { %v3719_v2 = vpack.c.bf16 %v236_v62, %v235_v59  ;;  %v3396_v59 = vld [vmem:[%s3693_s27 + $0xdc] sm:$0xf]  ;;  %v3395_v61 = vld [vmem:[%s3693_s27 + $0xd4] sm:$0xf]  ;;  %v2950_v63 = vor.u32 %v3400_v56, %v2949_v55  ;;  %v2942_v0 = vor.u32 %v3399_v58, %v2941_v57  ;;  %v3405_v7 = vld [vmem:[%s3693_s27 + $0x11c] sm:$0xf0] }
  0x33   : > { %v2943_v62 = vld [vmem:[%s3693_s27 + $0xf0] sm:$0xf0]  ;;  %v2954_v1 = vor.u32 %v3396_v59, %v2951_v60  ;;  %v3402_v8 = vld [vmem:[%s3693_s27 + $0x10c] sm:$0xf]  ;;  %v3401_v10 = vld [vmem:[%s3693_s27 + $0x104] sm:$0xf] }
  0x34   : > { %2807 = vmatmul.msk.bf16.vlgmr.msra.gmra.mxu0 %vm370_vm4, %v3719_v2  ;;  %2808 = vmatmul.msk.bf16.vlgmr.msra.gmra.mxu1 %vm370_vm4, %v3719_v2  ;;  %v2985_v9 = vld [vmem:[%s3693_s27 + $0x128] sm:$0xf0]  ;;  %v2977_v11 = vld [vmem:[%s3693_s27 + $0x120] sm:$0xf0]  ;;  %v2999_v22 = vld [vmem:[%s3693_s27 + $0x118] sm:$0xf] }
  0x35   : > { %2809 = vmatmul.msk.bf16.vlgmr.msra.gmra.mxu2 %vm370_vm4, %v3719_v2  ;;  %2810 = vmatmul.msk.bf16.vlgmr.msra.gmra.mxu3 %vm370_vm4, %v3719_v2  ;;  %v3408_v23 = vld [vmem:[%s3693_s27 + $0x134] sm:$0xf0]  ;;  %v2991_v25 = vld [vmem:[%s3693_s27 + $0x110] sm:$0xf]  ;;  %v3033_v43 = vld [vmem:[%s3693_s27 + $0x148] sm:$0xf] }
  0x36   : > { %602 = vmatpush.bf16.msra.mxu2 %v2834_v3  ;;  %574 = vmatpush.bf16.msra.mxu0 %v2826_v4  ;;  %v2946_v3 = vor.u32 %v3395_v61, %v2943_v62  ;;  %v2983_v4 = vld [vmem:[%s3693_s27 + $0x108] sm:$0xf]  ;;  %v3407_v26 = vld [vmem:[%s3693_s27 + $0x12c] sm:$0xf0]  ;;  %v3000_v32 = vor.u32 %v3408_v23, %v2999_v22  ;;  %v3025_v46 = vld [vmem:[%s3693_s27 + $0x140] sm:$0xf] }
  0x37   : > { %616 = vmatpush.bf16.msra.mxu3 %v2838_v5  ;;  %588 = vmatpush.bf16.msra.mxu1 %v2830_v6  ;;  %v3406_v5 = vld [vmem:[%s3693_s27 + $0x124] sm:$0xf0]  ;;  %v2975_v6 = vld [vmem:[%s3693_s27 + $0x100] sm:$0xf]  ;;  %v2992_v33 = vor.u32 %v3407_v26, %v2991_v25  ;;  %v3410_v48 = vld [vmem:[%s3693_s27 + $0x14c] sm:$0xf] }
  0x38   : > { %v2984_v12 = vor.u32 %v3406_v5, %v2983_v4  ;;  %v2976_v13 = vor.u32 %v3405_v7, %v2975_v6  ;;  %v3414_v44 = vld [vmem:[%s3693_s27 + $0x164] sm:$0xf0]  ;;  %v3413_v47 = vld [vmem:[%s3693_s27 + $0x15c] sm:$0xf0]  ;;  %v3035_v50 = vld [vmem:[%s3693_s27 + $0x168] sm:$0xf0] }
  0x39   : > { %v3034_v60 = vor.u32 %v3414_v44, %v3033_v43  ;;  %v3026_v61 = vor.u32 %v3413_v47, %v3025_v46  ;;  %v3041_v43 = vld [vmem:[%s3693_s27 + $0x150] sm:$0xf]  ;;  %v3412_v46 = vld [vmem:[%s3693_s27 + $0x15c] sm:$0xf] }
  0x3a   : > { %v3415_v44 = vld [vmem:[%s3693_s27 + $0x16c] sm:$0xf0] }
  0x44   : > { %2811 = vmatmul.msk.bf16.vlgmr.msrb.gmra.mxu0 %vm370_vm4, %v3719_v2  ;;  %2812 = vmatmul.msk.bf16.vlgmr.msrb.gmra.mxu1 %vm370_vm4, %v3719_v2 }
  0x45   : > { %2813 = vmatmul.msk.bf16.vlgmr.msrb.gmra.mxu2 %vm370_vm4, %v3719_v2  ;;  %2814 = vmatmul.msk.bf16.vlgmr.msrb.gmra.mxu3 %vm370_vm4, %v3719_v2 }
  0x46   : > { %658 = vmatpush.bf16.msrb.mxu2 %v2850_v15  ;;  %630 = vmatpush.bf16.msrb.mxu0 %v2842_v16  ;;  %v2988_v15 = vor.u32 %v3402_v8, %v2985_v9  ;;  %v2980_v16 = vor.u32 %v3401_v10, %v2977_v11 }
  0x47   : > { %672 = vmatpush.bf16.msrb.mxu3 %v2854_v17  ;;  %644 = vmatpush.bf16.msrb.mxu1 %v2846_v18  ;;  %v240_v17 = vadd.f32 1.0, %v238_v14  ;;  %v239_v18 = vld [vmem:[%s190_s3 + $0x8] sm:$0xff] }
  0x48   : > { %v241_v20 = vadd.f32 1.0, %v239_v18 }
  0x49   : > { %v242_v19 = vmul.f32 8.0, %v240_v17 }
  0x4a   : > { %v243_v24 = vmul.f32 8.0, %v241_v20 }
  0x4b   : > { %v2773_v21 = vadd.f32 -1.0, %v242_v19 }
  0x4c   : > { %v2774_v36 = vadd.f32 -1.0, %v243_v24 }
  0x4d   : > { %v246_v31 = vmul.f32 0.5, %v2773_v21 }
  0x4e   : > { %v247_v38 = vmul.f32 0.5, %v2774_v36  ;;  %v3416_v36 = vld [vmem:[%s3693_s27 + $0x174] sm:$0xf0] }
  0x4f   : > { %v248_v37 = vfloor.f32 %v246_v31 }
  0x54   : > { %2855 = vmatmul.msk.bf16.vlgmr.msra.gmra.mxu0 %vm370_vm4, %v3719_v2  ;;  %2856 = vmatmul.msk.bf16.vlgmr.msra.gmra.mxu1 %vm370_vm4, %v3719_v2 }
  0x55   : > { %2857 = vmatmul.msk.bf16.vlgmr.msra.gmra.mxu2 %vm370_vm4, %v3719_v2  ;;  %2858 = vmatmul.msk.bf16.vlgmr.msra.gmra.mxu3 %vm370_vm4, %v3719_v2 }
  0x56   : > { %796 = vmatpush.bf16.msra.mxu2 %v2884_v27  ;;  %768 = vmatpush.bf16.msra.mxu0 %v2876_v28  ;;  %v3404_v27 = vld [vmem:[%s3693_s27 + $0x11c] sm:$0xf] }
  0x57   : > { %810 = vmatpush.bf16.msra.mxu3 %v2888_v29  ;;  %782 = vmatpush.bf16.msra.mxu1 %v2880_v30  ;;  %v3001_v28 = vld [vmem:[%s3693_s27 + $0x138] sm:$0xf0]  ;;  %v3403_v29 = vld [vmem:[%s3693_s27 + $0x114] sm:$0xf] }
  0x58   : > { %v2993_v30 = vld [vmem:[%s3693_s27 + $0x130] sm:$0xf0]  ;;  %v3004_v34 = vor.u32 %v3404_v27, %v3001_v28 }
  0x59   : > { %v2996_v35 = vor.u32 %v3403_v29, %v2993_v30 }
  0x64   : > { %2859 = vmatmul.msk.bf16.vlgmr.msrb.gmra.mxu0 %vm370_vm4, %v3719_v2  ;;  %2860 = vmatmul.msk.bf16.vlgmr.msrb.gmra.mxu1 %vm370_vm4, %v3719_v2 }
  0x65   : > { %2861 = vmatmul.msk.bf16.vlgmr.msrb.gmra.mxu2 %vm370_vm4, %v3719_v2  ;;  %2862 = vmatmul.msk.bf16.vlgmr.msrb.gmra.mxu3 %vm370_vm4, %v3719_v2 }
  0x66   : > { %852 = vmatpush.bf16.msrb.mxu2 %v2900_v39  ;;  %824 = vmatpush.bf16.msrb.mxu0 %v2892_v40  ;;  %v3845_v39 = vsub.f32 %v246_v31, %v248_v37  ;;  %v3847_v40 = vcvt.f32.s32 %v248_v37 }
  0x67   : > { %866 = vmatpush.bf16.msrb.mxu3 %v2904_v41  ;;  %838 = vmatpush.bf16.msrb.mxu1 %v2896_v42  ;;  %v249_v41 = vfloor.f32 %v247_v38 }
  0x68   : > { %vm254_vm5 = vcmp.eq.s32.totalorder %v3847_v40, 0  ;;  %v3851_v42 = vsub.f32 1.0, %v3845_v39  ;;  %vm260_vm6 = vcmp.eq.s32.totalorder %v3847_v40, 4294967295  ;;  %vm266_vm7 = vcmp.eq.s32.totalorder %v3847_v40, 1 }
  0x69   : > { %vm274_vm8 = vcmp.eq.s32.totalorder %v3847_v40, 2  ;;  %v3858_v45 = vsub.f32 %v247_v38, %v249_v41  ;;  %v3863_v49 = vcvt.f32.s32 %v249_v41  ;;  %v270_v57 = vsel %vm254_vm5, %v3845_v39, 0.0 }
  0x6a   : > { %v268_v56 = vsel %vm266_vm7, %v3851_v42, 0.0  ;;  %v278_v59 = vsel %vm266_vm7, %v3845_v39, 0.0  ;;  %vm282_vm9 = vcmp.eq.s32.totalorder %v3847_v40, 3  ;;  %v276_v62 = vsel %vm274_vm8, %v3851_v42, 0.0 }
  0x6b   : > { %vm255_vm10 = vcmp.eq.s32.totalorder %v3863_v49, 0  ;;  %vm261_vm11 = vcmp.eq.s32.totalorder %v3863_v49, 4294967295  ;;  %vm267_vm12 = vcmp.eq.s32.totalorder %v3863_v49, 1  ;;  %v3897_v4 = vadd.f32 %v270_v57, %v268_v56 }
  0x6c   : > { %v284_v5 = vsel %vm282_vm9, %v3851_v42, 0.0  ;;  %v286_v6 = vsel %vm274_vm8, %v3845_v39, 0.0  ;;  %v3909_v7 = vadd.f32 %v278_v59, %v276_v62  ;;  %v263_v9 = vsel %vm261_vm11, %v3858_v45, 0.0 }
  0x6d   : > { %v271_v11 = vsel %vm255_vm10, %v3858_v45, 0.0  ;;  %vm275_vm13 = vcmp.eq.s32.totalorder %v3863_v49, 2  ;;  %vm290_vm14 = vcmp.eq.s32.totalorder %v3847_v40, 4  ;;  %vm283_vm15 = vcmp.eq.s32.totalorder %v3863_v49, 3 }
  0x6e   : > { %vm298_vm0 = vcmp.eq.s32.totalorder %v3847_v40, 5  ;;  %v279_v21 = vsel %vm267_vm12, %v3858_v45, 0.0  ;;  %vm306_vm1 = vcmp.eq.s32.totalorder %v3847_v40, 6  ;;  %v292_v24 = vsel %vm290_vm14, %v3851_v42, 0.0 }
  0x6f   : > { %v294_v25 = vsel %vm282_vm9, %v3845_v39, 0.0  ;;  %v287_v27 = vsel %vm275_vm13, %v3858_v45, 0.0  ;;  %v300_v28 = vsel %vm298_vm0, %v3851_v42, 0.0  ;;  %v302_v29 = vsel %vm290_vm14, %v3845_v39, 0.0 }
  0x70   : > { %v308_v31 = vsel %vm306_vm1, %v3851_v42, 0.0  ;;  %vm314_vm2 = vcmp.eq.s32.totalorder %v3847_v40, 7  ;;  %vm291_vm3 = vcmp.eq.s32.totalorder %v3863_v49, 4  ;;  %v3042_v62 = vor.u32 %v3415_v44, %v3041_v43  ;;  %v3083_v43 = vld [vmem:[%s3693_s27 + $0x188] sm:$0xf] }
  0x71   : > { %v316_v57 = vsel %vm314_vm2, %v3851_v42, 0.0  ;;  %vm315_vm7 = vcmp.eq.s32.totalorder %v3863_v49, 7  ;;  %v3422_v44 = vld [vmem:[%s3693_s27 + $0x1a4] sm:$0xf0] }
  0x74   : > { %2905 = vmatmul.msk.bf16.vlgmr.msra.gmra.mxu0 %vm370_vm4, %v3719_v2  ;;  %2906 = vmatmul.msk.bf16.vlgmr.msra.gmra.mxu1 %vm370_vm4, %v3719_v2 }
  0x75   : > { %2907 = vmatmul.msk.bf16.vlgmr.msra.gmra.mxu2 %vm370_vm4, %v3719_v2  ;;  %2908 = vmatmul.msk.bf16.vlgmr.msra.gmra.mxu3 %vm370_vm4, %v3719_v2 }
  0x76   : > { %990 = vmatpush.bf16.msra.mxu2 %v2934_v51  ;;  %962 = vmatpush.bf16.msra.mxu0 %v2926_v52  ;;  %v3409_v51 = vld [vmem:[%s3693_s27 + $0x144] sm:$0xf] }
  0x77   : > { %1004 = vmatpush.bf16.msra.mxu3 %v2938_v53  ;;  %976 = vmatpush.bf16.msra.mxu1 %v2930_v54  ;;  %v3027_v52 = vld [vmem:[%s3693_s27 + $0x160] sm:$0xf0]  ;;  %v258_v53 = vsel %vm254_vm5, %v3851_v42, 0.0  ;;  %v262_v54 = vsel %vm260_vm6, %v3845_v39, 0.0  ;;  %vm299_vm5 = vcmp.eq.s32.totalorder %v3863_v49, 5  ;;  %vm307_vm6 = vcmp.eq.s32.totalorder %v3863_v49, 6 }
  0x78   : > { %v3421_v49 = vld [vmem:[%s3693_s27 + $0x19c] sm:$0xf0] }
  0x84   : > { %2909 = vmatmul.msk.bf16.vlgmr.msrb.gmra.mxu0 %vm370_vm4, %v3719_v2  ;;  %2910 = vmatmul.msk.bf16.vlgmr.msrb.gmra.mxu1 %vm370_vm4, %v3719_v2 }
  0x85   : > { %2911 = vmatmul.msk.bf16.vlgmr.msrb.gmra.mxu2 %vm370_vm4, %v3719_v2  ;;  %2912 = vmatmul.msk.bf16.vlgmr.msrb.gmra.mxu3 %vm370_vm4, %v3719_v2 }
  0x86   : > { %1046 = vmatpush.bf16.msrb.mxu2 %v2950_v63  ;;  %1018 = vmatpush.bf16.msrb.mxu0 %v2942_v0  ;;  %v3886_v63 = vsub.f32 1.0, %v3858_v45  ;;  %v3038_v0 = vor.u32 %v3410_v48, %v3035_v50  ;;  %v3968_v50 = vadd.f32 %v302_v29, %v300_v28  ;;  %v311_v29 = vsel %vm299_vm5, %v3858_v45, 0.0 }
  0x87   : > { %1060 = vmatpush.bf16.msrb.mxu3 %v2954_v1  ;;  %1032 = vmatpush.bf16.msrb.mxu1 %v2946_v3  ;;  %v3030_v1 = vor.u32 %v3409_v51, %v3027_v52  ;;  %v3895_v3 = vadd.f32 %v262_v54, %v258_v53  ;;  %v3051_v51 = vld [vmem:[%s3693_s27 + $0x178] sm:$0xf0]  ;;  %v3411_v52 = vld [vmem:[%s3693_s27 + $0x154] sm:$0xf] }
  0x88   : > { %v259_v8 = vsel %vm255_vm10, %v3886_v63, 0.0  ;;  %v269_v10 = vsel %vm267_vm12, %v3886_v63, 0.0  ;;  %v277_v23 = vsel %vm275_vm13, %v3886_v63, 0.0  ;;  %v285_v26 = vsel %vm283_vm15, %v3886_v63, 0.0  ;;  %v3043_v53 = vld [vmem:[%s3693_s27 + $0x170] sm:$0xf0] }
  0x89   : > { %v3925_v19 = vadd.f32 %v263_v9, %v259_v8  ;;  %v3927_v20 = vadd.f32 %v271_v11, %v269_v10  ;;  %v3963_v41 = vadd.f32 %v279_v21, %v277_v23  ;;  %v3986_v40 = vadd.f32 %v287_v27, %v285_v26 }
  0x8a   : > { %v309_v28 = vsel %vm307_vm6, %v3886_v63, 0.0 }
  0x94   : > { %2955 = vmatmul.msk.bf16.vlgmr.msra.gmra.mxu0 %vm370_vm4, %v3719_v2  ;;  %2956 = vmatmul.msk.bf16.vlgmr.msra.gmra.mxu1 %vm370_vm4, %v3719_v2 }
  0x95   : > { %2957 = vmatmul.msk.bf16.vlgmr.msra.gmra.mxu2 %vm370_vm4, %v3719_v2  ;;  %2958 = vmatmul.msk.bf16.vlgmr.msra.gmra.mxu3 %vm370_vm4, %v3719_v2 }
  0x96   : > { %1184 = vmatpush.bf16.msra.mxu2 %v2984_v12  ;;  %1156 = vmatpush.bf16.msra.mxu0 %v2976_v13  ;;  %v3917_v13 = vadd.f32 %v286_v6, %v284_v5  ;;  %v3054_v5 = vor.u32 %v3412_v46, %v3051_v51  ;;  %v3046_v6 = vor.u32 %v3411_v52, %v3043_v53  ;;  %v3085_v52 = vld [vmem:[%s3693_s27 + $0x1a8] sm:$0xf0]  ;;  %v3417_v53 = vld [vmem:[%s3693_s27 + $0x184] sm:$0xf] }
  0x97   : > { %1198 = vmatpush.bf16.msra.mxu3 %v2988_v15  ;;  %1170 = vmatpush.bf16.msra.mxu1 %v2980_v16 }
  0xa4   : > { %2959 = vmatmul.msk.bf16.vlgmr.msrb.gmra.mxu0 %vm370_vm4, %v3719_v2  ;;  %2960 = vmatmul.msk.bf16.vlgmr.msrb.gmra.mxu1 %vm370_vm4, %v3719_v2 }
  0xa5   : > { %2961 = vmatmul.msk.bf16.vlgmr.msrb.gmra.mxu2 %vm370_vm4, %v3719_v2  ;;  %2962 = vmatmul.msk.bf16.vlgmr.msrb.gmra.mxu3 %vm370_vm4, %v3719_v2 }
  0xa6   : > { %1240 = vmatpush.bf16.msrb.mxu2 %v3000_v32  ;;  %1212 = vmatpush.bf16.msrb.mxu0 %v2992_v33  ;;  %v310_v32 = vsel %vm298_vm0, %v3845_v39, 0.0  ;;  %v3956_v33 = vadd.f32 %v294_v25, %v292_v24 }
  0xa7   : > { %1254 = vmatpush.bf16.msrb.mxu3 %v3004_v34  ;;  %1226 = vmatpush.bf16.msrb.mxu1 %v2996_v35  ;;  %v318_v34 = vsel %vm306_vm1, %v3845_v39, 0.0  ;;  %v3049_v35 = vld [vmem:[%s3693_s27 + $0x158] sm:$0xf]  ;;  %v3992_v42 = vadd.f32 %v310_v32, %v308_v31 }
  0xa8   : > { %v3994_v8 = vadd.f32 %v318_v34, %v316_v57  ;;  %v317_v34 = vsel %vm315_vm7, %v3886_v63, 0.0 }
  0xb1   : > { %v383_v55 = vpop.f32.mrf.mxu0  ;;  %v397_v58 = vpop.f32.mrf.mxu1 }
  0xb2   : > { %v486_v15 = vmul.f32 %v383_v55, %v3895_v3  ;;  %v488_v16 = vmul.f32 %v397_v58, %v3897_v4  ;;  %v293_v58 = vsel %vm291_vm3, %v3886_v63, 0.0 }
  0xb4   : > { %3005 = vmatmul.msk.bf16.vlgmr.msra.gmra.mxu0 %vm370_vm4, %v3719_v2  ;;  %3006 = vmatmul.msk.bf16.vlgmr.msra.gmra.mxu1 %vm370_vm4, %v3719_v2  ;;  %v490_v30 = vadd.f32 %v488_v16, %v486_v15 }
  0xb5   : > { %3007 = vmatmul.msk.bf16.vlgmr.msra.gmra.mxu2 %vm370_vm4, %v3719_v2  ;;  %3008 = vmatmul.msk.bf16.vlgmr.msra.gmra.mxu3 %vm370_vm4, %v3719_v2 }
  0xb6   : > { %1378 = vmatpush.bf16.msra.mxu2 %v3034_v60  ;;  %1350 = vmatpush.bf16.msra.mxu0 %v3026_v61  ;;  %v295_v60 = vsel %vm283_vm15, %v3858_v45, 0.0  ;;  %v3050_v61 = vor.u32 %v3416_v36, %v3049_v35  ;;  %v319_v35 = vsel %vm307_vm6, %v3858_v45, 0.0 }
  0xb7   : > { %1392 = vmatpush.bf16.msra.mxu3 %v3038_v0  ;;  %1364 = vmatpush.bf16.msra.mxu1 %v3030_v1 }
  0xb8   : > { %v411_v12 = vpop.f32.mrf.mxu2  ;;  %v425_v14 = vpop.f32.mrf.mxu3 }
  0xb9   : > { %v385_v17 = vpop.f32.mrf.mxu0  ;;  %v399_v18 = vpop.f32.mrf.mxu1  ;;  %v492_v22 = vmul.f32 %v411_v12, %v3909_v7  ;;  %v496_v38 = vmul.f32 %v425_v14, %v3917_v13  ;;  %v4003_v12 = vadd.f32 %v295_v60, %v293_v58  ;;  %v3084_v58 = vor.u32 %v3422_v44, %v3083_v43 }
  0xba   : > { %v487_v39 = vmul.f32 %v385_v17, %v3925_v19  ;;  %v489_v54 = vmul.f32 %v399_v18, %v3927_v20  ;;  %v301_v17 = vsel %vm299_vm5, %v3886_v63, 0.0  ;;  %v303_v18 = vsel %vm291_vm3, %v3858_v45, 0.0 }
  0xbb   : > { %v494_v37 = vadd.f32 %v492_v22, %v490_v30  ;;  %v4025_v32 = vadd.f32 %v303_v18, %v301_v17  ;;  %v4039_v63 = vadd.f32 %v319_v35, %v317_v34  ;;  %v3099_v17 = vld [vmem:[%s3693_s27 + $0x198] sm:$0xf] }
  0xbc   : > { %v491_v9 = vadd.f32 %v489_v54, %v487_v39  ;;  %v3077_v39 = vld [vmem:[%s3693_s27 + $0x1a0] sm:$0xf0]  ;;  %v3424_v18 = vld [vmem:[%s3693_s27 + $0x1b4] sm:$0xf0] }
  0xbd   : > { %v498_v0 = vadd.f32 %v496_v38, %v494_v37  ;;  %v4031_v38 = vadd.f32 %v311_v29, %v309_v28  ;;  %v3101_v28 = vld [vmem:[%s3693_s27 + $0x1b8] sm:$0xf0]  ;;  %v3419_v29 = vld [vmem:[%s3693_s27 + $0x194] sm:$0xf]  ;;  %v3100_v43 = vor.u32 %v3424_v18, %v3099_v17  ;;  %v3135_v18 = vld [vmem:[%s3693_s27 + $0x1e8] sm:$0xf0] }
  0xc0   : > { %v413_v47 = vpop.f32.mrf.mxu2  ;;  %v427_v48 = vpop.f32.mrf.mxu3 }
  0xc1   : > { %v439_v55 = vpop.f32.mrf.mxu0  ;;  %v453_v56 = vpop.f32.mrf.mxu1  ;;  %v493_v1 = vmul.f32 %v413_v47, %v3963_v41  ;;  %v497_v21 = vmul.f32 %v427_v48, %v3986_v40  ;;  %v3075_v47 = vld [vmem:[%s3693_s27 + $0x180] sm:$0xf]  ;;  %v3418_v48 = vld [vmem:[%s3693_s27 + $0x18c] sm:$0xf] }
  0xc2   : > { %v500_v59 = vmul.f32 %v439_v55, %v3956_v33  ;;  %v504_v11 = vmul.f32 %v453_v56, %v3968_v50 }
  0xc3   : > { %v495_v14 = vadd.f32 %v493_v1, %v491_v9 }
  0xc4   : > { %3009 = vmatmul.msk.bf16.vlgmr.msrb.gmra.mxu0 %vm370_vm4, %v3719_v2  ;;  %3010 = vmatmul.msk.bf16.vlgmr.msrb.gmra.mxu1 %vm370_vm4, %v3719_v2  ;;  %v502_v10 = vadd.f32 %v500_v59, %v498_v0  ;;  %v3076_v59 = vor.u32 %v3421_v49, %v3075_v47  ;;  %v3080_v0 = vor.u32 %v3417_v53, %v3077_v39 }
  0xc5   : > { %3011 = vmatmul.msk.bf16.vlgmr.msrb.gmra.mxu2 %vm370_vm4, %v3719_v2  ;;  %3012 = vmatmul.msk.bf16.vlgmr.msrb.gmra.mxu3 %vm370_vm4, %v3719_v2  ;;  %v499_v30 = vadd.f32 %v497_v21, %v495_v14 }
  0xc6   : > { %1434 = vmatpush.bf16.msrb.mxu2 %v3050_v61  ;;  %1406 = vmatpush.bf16.msrb.mxu0 %v3042_v62  ;;  %v506_v22 = vadd.f32 %v504_v11, %v502_v10  ;;  %v3088_v62 = vor.u32 %v3418_v48, %v3085_v52 }
  0xc7   : > { %1448 = vmatpush.bf16.msrb.mxu3 %v3054_v5  ;;  %1420 = vmatpush.bf16.msrb.mxu1 %v3046_v6 }
  0xc8   : > { %v467_v15 = vpop.f32.mrf.mxu2  ;;  %v481_v16 = vpop.f32.mrf.mxu3 }
  0xc9   : > { %v508_v23 = vmul.f32 %v467_v15, %v3992_v42  ;;  %v512_v24 = vmul.f32 %v481_v16, %v3994_v8  ;;  %v441_v25 = vpop.f32.mrf.mxu0  ;;  %v455_v26 = vpop.f32.mrf.mxu1 }
  0xca   : > { %v501_v27 = vmul.f32 %v441_v25, %v4003_v12  ;;  %v505_v46 = vmul.f32 %v455_v26, %v4025_v32  ;;  %v3420_v25 = vld [vmem:[%s3693_s27 + $0x19c] sm:$0xf] }
  0xcb   : > { %v510_v31 = vadd.f32 %v508_v23, %v506_v22  ;;  %v3091_v23 = vld [vmem:[%s3693_s27 + $0x190] sm:$0xf]  ;;  %v3104_v49 = vor.u32 %v3420_v25, %v3101_v28 }
  0xcc   : > { %v503_v37 = vadd.f32 %v501_v27, %v499_v30  ;;  %v3093_v30 = vld [vmem:[%s3693_s27 + $0x1b0] sm:$0xf0] }
  0xcd   : > { %v514_v36 = vadd.f32 %v512_v24, %v510_v31  ;;  %v3423_v24 = vld [vmem:[%s3693_s27 + $0x1ac] sm:$0xf0]  ;;  %v3096_v48 = vor.u32 %v3419_v29, %v3093_v30 }
  0xce   : > { %v507_v54 = vadd.f32 %v505_v46, %v503_v37  ;;  %v3092_v44 = vor.u32 %v3423_v24, %v3091_v23 }
  0xcf   : > { %516 = vst [vmem:[%s4035_s6] sm:$0xff] %v514_v36 }
  0xd0   : > { %v469_v45 = vpop.f32.mrf.mxu2  ;;  %v483_v51 = vpop.f32.mrf.mxu3 }
  0xd1   : > { %v509_v55 = vmul.f32 %v469_v45, %v4031_v38  ;;  %v576_v56 = vpop.f32.mrf.mxu0  ;;  %v590_v57 = vpop.f32.mrf.mxu1  ;;  %v513_v61 = vmul.f32 %v483_v51, %v4039_v63 }
  0xd2   : > { %v679_v9 = vmul.f32 %v576_v56, %v3895_v3  ;;  %v681_v10 = vmul.f32 %v590_v57, %v3897_v4 }
  0xd3   : > { %v511_v60 = vadd.f32 %v509_v55, %v507_v54 }
  0xd4   : > { %3055 = vmatmul.msk.bf16.vlgmr.msra.gmra.mxu0 %vm370_vm4, %v3719_v2  ;;  %3056 = vmatmul.msk.bf16.vlgmr.msra.gmra.mxu1 %vm370_vm4, %v3719_v2  ;;  %v683_v16 = vadd.f32 %v681_v10, %v679_v9  ;;  %v3430_v9 = vld [vmem:[%s3693_s27 + $0x1e4] sm:$0xf0]  ;;  %v3125_v10 = vld [vmem:[%s3693_s27 + $0x1c0] sm:$0xf] }
  0xd5   : > { %v515_v1 = vadd.f32 %v513_v61, %v511_v60  ;;  %3057 = vmatmul.msk.bf16.vlgmr.msra.gmra.mxu2 %vm370_vm4, %v3719_v2  ;;  %3058 = vmatmul.msk.bf16.vlgmr.msra.gmra.mxu3 %vm370_vm4, %v3719_v2 }
  0xd6   : > { %1572 = vmatpush.bf16.msra.mxu2 %v3084_v58  ;;  %1544 = vmatpush.bf16.msra.mxu0 %v3076_v59 }
  0xd7   : > { %517 = vst [vmem:[%s4035_s6 + $0x8] sm:$0xff] %v515_v1  ;;  %1586 = vmatpush.bf16.msra.mxu3 %v3088_v62  ;;  %1558 = vmatpush.bf16.msra.mxu1 %v3080_v0 }
  0xd8   : > { %v604_v5 = vpop.f32.mrf.mxu2  ;;  %v618_v6 = vpop.f32.mrf.mxu3 }
  0xd9   : > { %v578_v11 = vpop.f32.mrf.mxu0  ;;  %v592_v14 = vpop.f32.mrf.mxu1  ;;  %v685_v15 = vmul.f32 %v604_v5, %v3909_v7  ;;  %v689_v22 = vmul.f32 %v618_v6, %v3917_v13  ;;  %v3133_v6 = vld [vmem:[%s3693_s27 + $0x1c8] sm:$0xf] }
  0xda   : > { %v680_v31 = vmul.f32 %v578_v11, %v3925_v19  ;;  %v682_v34 = vmul.f32 %v592_v14, %v3927_v20  ;;  %v3429_v14 = vld [vmem:[%s3693_s27 + $0x1dc] sm:$0xf0] }
  0xdb   : > { %v687_v21 = vadd.f32 %v685_v15, %v683_v16  ;;  %v3426_v15 = vld [vmem:[%s3693_s27 + $0x1cc] sm:$0xf]  ;;  %v3126_v28 = vor.u32 %v3429_v14, %v3125_v10 }
  0xdc   : > { %v684_v45 = vadd.f32 %v682_v34, %v680_v31  ;;  %v3138_v31 = vor.u32 %v3426_v15, %v3135_v18 }
  0xdd   : > { %v691_v46 = vadd.f32 %v689_v22, %v687_v21  ;;  %v3425_v21 = vld [vmem:[%s3693_s27 + $0x1c4] sm:$0xf] }
  0xde   : > { %v3127_v22 = vld [vmem:[%s3693_s27 + $0x1e0] sm:$0xf0] }
  0xdf   : > { %v3130_v34 = vor.u32 %v3425_v21, %v3127_v22 }
  0xe0   : > { %v606_v26 = vpop.f32.mrf.mxu2  ;;  %v620_v27 = vpop.f32.mrf.mxu3 }
  0xe1   : > { %v632_v35 = vpop.f32.mrf.mxu0  ;;  %v646_v36 = vpop.f32.mrf.mxu1  ;;  %v686_v47 = vmul.f32 %v606_v26, %v3963_v41  ;;  %v690_v55 = vmul.f32 %v620_v27, %v3986_v40  ;;  %v3134_v27 = vor.u32 %v3430_v9, %v3133_v6 }
  0xe2   : > { %v693_v37 = vmul.f32 %v632_v35, %v3956_v33  ;;  %v697_v52 = vmul.f32 %v646_v36, %v3968_v50 }
  0xe3   : > { %v688_v53 = vadd.f32 %v686_v47, %v684_v45  ;;  %v3149_v45 = vld [vmem:[%s3693_s27 + $0x1d8] sm:$0xf] }
  0xe4   : > { %3059 = vmatmul.msk.bf16.vlgmr.msrb.gmra.mxu0 %vm370_vm4, %v3719_v2  ;;  %3060 = vmatmul.msk.bf16.vlgmr.msrb.gmra.mxu1 %vm370_vm4, %v3719_v2  ;;  %v695_v51 = vadd.f32 %v693_v37, %v691_v46 }
  0xe5   : > { %3061 = vmatmul.msk.bf16.vlgmr.msrb.gmra.mxu2 %vm370_vm4, %v3719_v2  ;;  %3062 = vmatmul.msk.bf16.vlgmr.msrb.gmra.mxu3 %vm370_vm4, %v3719_v2  ;;  %v692_v62 = vadd.f32 %v690_v55, %v688_v53  ;;  %v3428_v55 = vld [vmem:[%s3693_s27 + $0x1dc] sm:$0xf] }
  0xe6   : > { %1628 = vmatpush.bf16.msrb.mxu2 %v3100_v43  ;;  %1600 = vmatpush.bf16.msrb.mxu0 %v3092_v44  ;;  %v699_v56 = vadd.f32 %v697_v52, %v695_v51  ;;  %v3432_v51 = vld [vmem:[%s3693_s27 + $0x1f4] sm:$0xf0] }
  0xe7   : > { %1642 = vmatpush.bf16.msrb.mxu3 %v3104_v49  ;;  %1614 = vmatpush.bf16.msrb.mxu1 %v3096_v48  ;;  %v3150_v6 = vor.u32 %v3432_v51, %v3149_v45  ;;  %v3185_v51 = vld [vmem:[%s3693_s27 + $0x228] sm:$0xf0] }
  0xe8   : > { %v660_v39 = vpop.f32.mrf.mxu2  ;;  %v674_v54 = vpop.f32.mrf.mxu3 }
  0xe9   : > { %v701_v57 = vmul.f32 %v660_v39, %v3992_v42  ;;  %v705_v58 = vmul.f32 %v674_v54, %v3994_v8  ;;  %v634_v59 = vpop.f32.mrf.mxu0  ;;  %v648_v60 = vpop.f32.mrf.mxu1  ;;  %v3141_v39 = vld [vmem:[%s3693_s27 + $0x1d0] sm:$0xf] }
  0xea   : > { %v694_v61 = vmul.f32 %v634_v59, %v4003_v12  ;;  %v698_v11 = vmul.f32 %v648_v60, %v4025_v32  ;;  %v3431_v54 = vld [vmem:[%s3693_s27 + $0x1ec] sm:$0xf0]  ;;  %v3427_v59 = vld [vmem:[%s3693_s27 + $0x1d4] sm:$0xf] }
  0xeb   : > { %v703_v0 = vadd.f32 %v701_v57, %v699_v56  ;;  %v3143_v60 = vld [vmem:[%s3693_s27 + $0x1f0] sm:$0xf0]  ;;  %v3142_v9 = vor.u32 %v3431_v54, %v3141_v39 }
  0xec   : > { %v696_v5 = vadd.f32 %v694_v61, %v692_v62  ;;  %v3146_v15 = vor.u32 %v3427_v59, %v3143_v60 }
  0xed   : > { %v707_v1 = vadd.f32 %v705_v58, %v703_v0  ;;  %v3151_v58 = vld [vmem:[%s3693_s27 + $0x1f8] sm:$0xf0] }
  0xee   : > { %v700_v23 = vadd.f32 %v698_v11, %v696_v5  ;;  %v3154_v14 = vor.u32 %v3428_v55, %v3151_v58 }
  0xef   : > { %2863 = vst [vmem:[%s4035_s6 + $0x10] sm:$0xff] %v707_v1 }
  0xf0   : > { %v662_v16 = vpop.f32.mrf.mxu2  ;;  %v676_v17 = vpop.f32.mrf.mxu3 }
  0xf1   : > { %v702_v24 = vmul.f32 %v662_v16, %v4031_v38  ;;  %v770_v25 = vpop.f32.mrf.mxu0  ;;  %v784_v26 = vpop.f32.mrf.mxu1  ;;  %v706_v30 = vmul.f32 %v676_v17, %v4039_v63 }
  0xf2   : > { %v873_v43 = vmul.f32 %v770_v25, %v3895_v3  ;;  %v875_v44 = vmul.f32 %v784_v26, %v3897_v4 }
  0xf3   : > { %v704_v29 = vadd.f32 %v702_v24, %v700_v23 }
  0xf4   : > { %3105 = vmatmul.msk.bf16.vlgmr.msra.gmra.mxu0 %vm370_vm4, %v3719_v2  ;;  %3106 = vmatmul.msk.bf16.vlgmr.msra.gmra.mxu1 %vm370_vm4, %v3719_v2  ;;  %v877_v48 = vadd.f32 %v875_v44, %v873_v43  ;;  %v3438_v43 = vld [vmem:[%s3693_s27 + $0x224] sm:$0xf0]  ;;  %v3175_v44 = vld [vmem:[%s3693_s27 + $0x200] sm:$0xf] }
  0xf5   : > { %v708_v35 = vadd.f32 %v706_v30, %v704_v29  ;;  %3107 = vmatmul.msk.bf16.vlgmr.msra.gmra.mxu2 %vm370_vm4, %v3719_v2  ;;  %3108 = vmatmul.msk.bf16.vlgmr.msra.gmra.mxu3 %vm370_vm4, %v3719_v2 }
  0xf6   : > { %1766 = vmatpush.bf16.msra.mxu2 %v3134_v27  ;;  %1738 = vmatpush.bf16.msra.mxu0 %v3126_v28 }
  0xf7   : > { %2864 = vst [vmem:[%s4035_s6 + $0x18] sm:$0xff] %v708_v35  ;;  %1780 = vmatpush.bf16.msra.mxu3 %v3138_v31  ;;  %1752 = vmatpush.bf16.msra.mxu1 %v3130_v34 }
  0xf8   : > { %v798_v36 = vpop.f32.mrf.mxu2  ;;  %v812_v37 = vpop.f32.mrf.mxu3 }
  0xf9   : > { %v772_v46 = vpop.f32.mrf.mxu0  ;;  %v786_v47 = vpop.f32.mrf.mxu1  ;;  %v879_v49 = vmul.f32 %v798_v36, %v3909_v7  ;;  %v883_v53 = vmul.f32 %v812_v37, %v3917_v13  ;;  %v3183_v37 = vld [vmem:[%s3693_s27 + $0x208] sm:$0xf] }
  0xfa   : > { %v874_v61 = vmul.f32 %v772_v46, %v3925_v19  ;;  %v876_v62 = vmul.f32 %v786_v47, %v3927_v20  ;;  %v3437_v47 = vld [vmem:[%s3693_s27 + $0x21c] sm:$0xf0] }
  0xfb   : > { %v881_v52 = vadd.f32 %v879_v49, %v877_v48  ;;  %v3434_v49 = vld [vmem:[%s3693_s27 + $0x20c] sm:$0xf]  ;;  %v3176_v58 = vor.u32 %v3437_v47, %v3175_v44 }
  0xfc   : > { %v878_v16 = vadd.f32 %v876_v62, %v874_v61  ;;  %v3188_v61 = vor.u32 %v3434_v49, %v3185_v51 }
  0xfd   : > { %v885_v10 = vadd.f32 %v883_v53, %v881_v52  ;;  %v3433_v52 = vld [vmem:[%s3693_s27 + $0x204] sm:$0xf] }
  0xfe   : > { %v3177_v53 = vld [vmem:[%s3693_s27 + $0x220] sm:$0xf0] }
  0xff   : > { %v3180_v62 = vor.u32 %v3433_v52, %v3177_v53 }
 0x100   : > { %v800_v56 = vpop.f32.mrf.mxu2  ;;  %v814_v57 = vpop.f32.mrf.mxu3 }
 0x101   : > { %v826_v0 = vpop.f32.mrf.mxu0  ;;  %v840_v1 = vpop.f32.mrf.mxu1  ;;  %v880_v11 = vmul.f32 %v800_v56, %v3963_v41  ;;  %v884_v24 = vmul.f32 %v814_v57, %v3986_v40  ;;  %v3184_v57 = vor.u32 %v3438_v43, %v3183_v37 }
 0x102   : > { %v887_v5 = vmul.f32 %v826_v0, %v3956_v33  ;;  %v891_v18 = vmul.f32 %v840_v1, %v3968_v50 }
 0x103   : > { %v882_v21 = vadd.f32 %v880_v11, %v878_v16  ;;  %v3199_v16 = vld [vmem:[%s3693_s27 + $0x218] sm:$0xf] }
 0x104   : > { %3109 = vmatmul.msk.bf16.vlgmr.msrb.gmra.mxu0 %vm370_vm4, %v3719_v2  ;;  %3110 = vmatmul.msk.bf16.vlgmr.msrb.gmra.mxu1 %vm370_vm4, %v3719_v2  ;;  %v889_v17 = vadd.f32 %v887_v5, %v885_v10 }
 0x105   : > { %3111 = vmatmul.msk.bf16.vlgmr.msrb.gmra.mxu2 %vm370_vm4, %v3719_v2  ;;  %3112 = vmatmul.msk.bf16.vlgmr.msrb.gmra.mxu3 %vm370_vm4, %v3719_v2  ;;  %v886_v31 = vadd.f32 %v884_v24, %v882_v21  ;;  %v3436_v24 = vld [vmem:[%s3693_s27 + $0x21c] sm:$0xf] }
 0x106   : > { %1822 = vmatpush.bf16.msrb.mxu2 %v3150_v6  ;;  %1794 = vmatpush.bf16.msrb.mxu0 %v3142_v9  ;;  %v893_v25 = vadd.f32 %v891_v18, %v889_v17  ;;  %v3440_v17 = vld [vmem:[%s3693_s27 + $0x234] sm:$0xf0] }
 0x107   : > { %1836 = vmatpush.bf16.msrb.mxu3 %v3154_v14  ;;  %1808 = vmatpush.bf16.msrb.mxu1 %v3146_v15  ;;  %v3200_v37 = vor.u32 %v3440_v17, %v3199_v16  ;;  %v3235_v17 = vld [vmem:[%s3693_s27 + $0x268] sm:$0xf0] }
 0x108   : > { %v854_v22 = vpop.f32.mrf.mxu2  ;;  %v868_v23 = vpop.f32.mrf.mxu3 }
 0x109   : > { %v895_v26 = vmul.f32 %v854_v22, %v3992_v42  ;;  %v899_v27 = vmul.f32 %v868_v23, %v3994_v8  ;;  %v828_v28 = vpop.f32.mrf.mxu0  ;;  %v842_v29 = vpop.f32.mrf.mxu1  ;;  %v3191_v22 = vld [vmem:[%s3693_s27 + $0x210] sm:$0xf] }
 0x10a   : > { %v888_v30 = vmul.f32 %v828_v28, %v4003_v12  ;;  %v892_v46 = vmul.f32 %v842_v29, %v4025_v32  ;;  %v3439_v23 = vld [vmem:[%s3693_s27 + $0x22c] sm:$0xf0]  ;;  %v3435_v28 = vld [vmem:[%s3693_s27 + $0x214] sm:$0xf] }
 0x10b   : > { %v897_v34 = vadd.f32 %v895_v26, %v893_v25  ;;  %v3193_v29 = vld [vmem:[%s3693_s27 + $0x230] sm:$0xf0]  ;;  %v3192_v43 = vor.u32 %v3439_v23, %v3191_v22 }
 0x10c   : > { %v890_v36 = vadd.f32 %v888_v30, %v886_v31  ;;  %v3196_v49 = vor.u32 %v3435_v28, %v3193_v29 }
 0x10d   : > { %v901_v35 = vadd.f32 %v899_v27, %v897_v34  ;;  %v3201_v27 = vld [vmem:[%s3693_s27 + $0x238] sm:$0xf0] }
 0x10e   : > { %v894_v39 = vadd.f32 %v892_v46, %v890_v36  ;;  %v3204_v47 = vor.u32 %v3436_v24, %v3201_v27 }
 0x10f   : > { %2913 = vst [vmem:[%s4035_s6 + $0x20] sm:$0xff] %v901_v35 }
 0x110   : > { %v856_v48 = vpop.f32.mrf.mxu2  ;;  %v870_v45 = vpop.f32.mrf.mxu3 }
 0x111   : > { %v896_v54 = vmul.f32 %v856_v48, %v4031_v38  ;;  %v964_v55 = vpop.f32.mrf.mxu0  ;;  %v978_v56 = vpop.f32.mrf.mxu1  ;;  %v900_v60 = vmul.f32 %v870_v45, %v4039_v63 }
 0x112   : > { %v1067_v6 = vmul.f32 %v964_v55, %v3895_v3  ;;  %v1069_v9 = vmul.f32 %v978_v56, %v3897_v4 }
 0x113   : > { %v898_v59 = vadd.f32 %v896_v54, %v894_v39 }
 0x114   : > { %3155 = vmatmul.msk.bf16.vlgmr.msra.gmra.mxu0 %vm370_vm4, %v3719_v2  ;;  %3156 = vmatmul.msk.bf16.vlgmr.msra.gmra.mxu1 %vm370_vm4, %v3719_v2  ;;  %v1071_v15 = vadd.f32 %v1069_v9, %v1067_v6  ;;  %v3446_v6 = vld [vmem:[%s3693_s27 + $0x264] sm:$0xf0]  ;;  %v3225_v9 = vld [vmem:[%s3693_s27 + $0x240] sm:$0xf] }
 0x115   : > { %v902_v0 = vadd.f32 %v900_v60, %v898_v59  ;;  %3157 = vmatmul.msk.bf16.vlgmr.msra.gmra.mxu2 %vm370_vm4, %v3719_v2  ;;  %3158 = vmatmul.msk.bf16.vlgmr.msra.gmra.mxu3 %vm370_vm4, %v3719_v2 }
 0x116   : > { %1960 = vmatpush.bf16.msra.mxu2 %v3184_v57  ;;  %1932 = vmatpush.bf16.msra.mxu0 %v3176_v58 }
 0x117   : > { %2914 = vst [vmem:[%s4035_s6 + $0x28] sm:$0xff] %v902_v0  ;;  %1974 = vmatpush.bf16.msra.mxu3 %v3188_v61  ;;  %1946 = vmatpush.bf16.msra.mxu1 %v3180_v62 }
 0x118   : > { %v992_v1 = vpop.f32.mrf.mxu2  ;;  %v1006_v5 = vpop.f32.mrf.mxu3 }
 0x119   : > { %v966_v10 = vpop.f32.mrf.mxu0  ;;  %v980_v11 = vpop.f32.mrf.mxu1  ;;  %v1073_v14 = vmul.f32 %v992_v1, %v3909_v7  ;;  %v1077_v21 = vmul.f32 %v1006_v5, %v3917_v13  ;;  %v3233_v5 = vld [vmem:[%s3693_s27 + $0x248] sm:$0xf] }
 0x11a   : > { %v1068_v30 = vmul.f32 %v966_v10, %v3925_v19  ;;  %v1070_v31 = vmul.f32 %v980_v11, %v3927_v20  ;;  %v3445_v11 = vld [vmem:[%s3693_s27 + $0x25c] sm:$0xf0] }
 0x11b   : > { %v1075_v18 = vadd.f32 %v1073_v14, %v1071_v15  ;;  %v3442_v14 = vld [vmem:[%s3693_s27 + $0x24c] sm:$0xf]  ;;  %v3226_v27 = vor.u32 %v3445_v11, %v3225_v9 }
 0x11c   : > { %v1072_v48 = vadd.f32 %v1070_v31, %v1068_v30  ;;  %v3238_v30 = vor.u32 %v3442_v14, %v3235_v17 }
 0x11d   : > { %v1079_v44 = vadd.f32 %v1077_v21, %v1075_v18  ;;  %v3441_v18 = vld [vmem:[%s3693_s27 + $0x244] sm:$0xf] }
 0x11e   : > { %v3227_v21 = vld [vmem:[%s3693_s27 + $0x260] sm:$0xf0] }
 0x11f   : > { %v3230_v31 = vor.u32 %v3441_v18, %v3227_v21 }
 0x120   : > { %v994_v25 = vpop.f32.mrf.mxu2  ;;  %v1008_v26 = vpop.f32.mrf.mxu3 }
 0x121   : > { %v1020_v34 = vpop.f32.mrf.mxu0  ;;  %v1034_v35 = vpop.f32.mrf.mxu1  ;;  %v1074_v46 = vmul.f32 %v994_v25, %v3963_v41  ;;  %v1078_v54 = vmul.f32 %v1008_v26, %v3986_v40  ;;  %v3234_v26 = vor.u32 %v3446_v6, %v3233_v5 }
 0x122   : > { %v1081_v36 = vmul.f32 %v1020_v34, %v3956_v33  ;;  %v1085_v51 = vmul.f32 %v1034_v35, %v3968_v50 }
 0x123   : > { %v1076_v52 = vadd.f32 %v1074_v46, %v1072_v48  ;;  %v3249_v48 = vld [vmem:[%s3693_s27 + $0x258] sm:$0xf] }
 0x124   : > { %3159 = vmatmul.msk.bf16.vlgmr.msrb.gmra.mxu0 %vm370_vm4, %v3719_v2  ;;  %3160 = vmatmul.msk.bf16.vlgmr.msrb.gmra.mxu1 %vm370_vm4, %v3719_v2  ;;  %v1083_v45 = vadd.f32 %v1081_v36, %v1079_v44 }
 0x125   : > { %3161 = vmatmul.msk.bf16.vlgmr.msrb.gmra.mxu2 %vm370_vm4, %v3719_v2  ;;  %3162 = vmatmul.msk.bf16.vlgmr.msrb.gmra.mxu3 %vm370_vm4, %v3719_v2  ;;  %v1080_v61 = vadd.f32 %v1078_v54, %v1076_v52  ;;  %v3444_v54 = vld [vmem:[%s3693_s27 + $0x25c] sm:$0xf] }
 0x126   : > { %2016 = vmatpush.bf16.msrb.mxu2 %v3200_v37  ;;  %1988 = vmatpush.bf16.msrb.mxu0 %v3192_v43  ;;  %v1087_v55 = vadd.f32 %v1085_v51, %v1083_v45  ;;  %v3448_v45 = vld [vmem:[%s3693_s27 + $0x274] sm:$0xf0] }
 0x127   : > { %2030 = vmatpush.bf16.msrb.mxu3 %v3204_v47  ;;  %2002 = vmatpush.bf16.msrb.mxu1 %v3196_v49  ;;  %v3250_v5 = vor.u32 %v3448_v45, %v3249_v48  ;;  %v3285_v45 = vld [vmem:[%s3693_s27 + $0x2a8] sm:$0xf0] }
 0x128   : > { %v1048_v53 = vpop.f32.mrf.mxu2  ;;  %v1062_v39 = vpop.f32.mrf.mxu3 }
 0x129   : > { %v1089_v56 = vmul.f32 %v1048_v53, %v3992_v42  ;;  %v1093_v57 = vmul.f32 %v1062_v39, %v3994_v8  ;;  %v1022_v58 = vpop.f32.mrf.mxu0  ;;  %v1036_v59 = vpop.f32.mrf.mxu1  ;;  %v3241_v53 = vld [vmem:[%s3693_s27 + $0x250] sm:$0xf] }
 0x12a   : > { %v1082_v60 = vmul.f32 %v1022_v58, %v4003_v12  ;;  %v1086_v10 = vmul.f32 %v1036_v59, %v4025_v32  ;;  %v3447_v39 = vld [vmem:[%s3693_s27 + $0x26c] sm:$0xf0]  ;;  %v3443_v58 = vld [vmem:[%s3693_s27 + $0x254] sm:$0xf] }
 0x12b   : > { %v1091_v62 = vadd.f32 %v1089_v56, %v1087_v55  ;;  %v3243_v59 = vld [vmem:[%s3693_s27 + $0x270] sm:$0xf0]  ;;  %v3242_v6 = vor.u32 %v3447_v39, %v3241_v53 }
 0x12c   : > { %v1084_v1 = vadd.f32 %v1082_v60, %v1080_v61  ;;  %v3246_v14 = vor.u32 %v3443_v58, %v3243_v59 }
 0x12d   : > { %v1095_v0 = vadd.f32 %v1093_v57, %v1091_v62  ;;  %v3251_v57 = vld [vmem:[%s3693_s27 + $0x278] sm:$0xf0] }
 0x12e   : > { %v1088_v22 = vadd.f32 %v1086_v10, %v1084_v1  ;;  %v3254_v11 = vor.u32 %v3444_v54, %v3251_v57 }
 0x12f   : > { %2963 = vst [vmem:[%s4035_s6 + $0x30] sm:$0xff] %v1095_v0 }
 0x130   : > { %v1050_v15 = vpop.f32.mrf.mxu2  ;;  %v1064_v16 = vpop.f32.mrf.mxu3 }
 0x131   : > { %v1090_v23 = vmul.f32 %v1050_v15, %v4031_v38  ;;  %v1158_v24 = vpop.f32.mrf.mxu0  ;;  %v1172_v25 = vpop.f32.mrf.mxu1  ;;  %v1094_v29 = vmul.f32 %v1064_v16, %v4039_v63 }
 0x132   : > { %v1261_v37 = vmul.f32 %v1158_v24, %v3895_v3  ;;  %v1263_v43 = vmul.f32 %v1172_v25, %v3897_v4 }
 0x133   : > { %v1092_v28 = vadd.f32 %v1090_v23, %v1088_v22 }
 0x134   : > { %3205 = vmatmul.msk.bf16.vlgmr.msra.gmra.mxu0 %vm370_vm4, %v3719_v2  ;;  %3206 = vmatmul.msk.bf16.vlgmr.msra.gmra.mxu1 %vm370_vm4, %v3719_v2  ;;  %v1265_v49 = vadd.f32 %v1263_v43, %v1261_v37  ;;  %v3454_v37 = vld [vmem:[%s3693_s27 + $0x2a4] sm:$0xf0]  ;;  %v3275_v43 = vld [vmem:[%s3693_s27 + $0x280] sm:$0xf] }
 0x135   : > { %v1096_v34 = vadd.f32 %v1094_v29, %v1092_v28  ;;  %3207 = vmatmul.msk.bf16.vlgmr.msra.gmra.mxu2 %vm370_vm4, %v3719_v2  ;;  %3208 = vmatmul.msk.bf16.vlgmr.msra.gmra.mxu3 %vm370_vm4, %v3719_v2 }
 0x136   : > { %2154 = vmatpush.bf16.msra.mxu2 %v3234_v26  ;;  %2126 = vmatpush.bf16.msra.mxu0 %v3226_v27 }
 0x137   : > { %2964 = vst [vmem:[%s4035_s6 + $0x38] sm:$0xff] %v1096_v34  ;;  %2168 = vmatpush.bf16.msra.mxu3 %v3238_v30  ;;  %2140 = vmatpush.bf16.msra.mxu1 %v3230_v31 }
 0x138   : > { %v1186_v35 = vpop.f32.mrf.mxu2  ;;  %v1200_v36 = vpop.f32.mrf.mxu3 }
 0x139   : > { %v1160_v44 = vpop.f32.mrf.mxu0  ;;  %v1174_v46 = vpop.f32.mrf.mxu1  ;;  %v1267_v47 = vmul.f32 %v1186_v35, %v3909_v7  ;;  %v1271_v52 = vmul.f32 %v1200_v36, %v3917_v13  ;;  %v3283_v36 = vld [vmem:[%s3693_s27 + $0x288] sm:$0xf] }
 0x13a   : > { %v1262_v60 = vmul.f32 %v1160_v44, %v3925_v19  ;;  %v1264_v61 = vmul.f32 %v1174_v46, %v3927_v20  ;;  %v3453_v46 = vld [vmem:[%s3693_s27 + $0x29c] sm:$0xf0] }
 0x13b   : > { %v1269_v51 = vadd.f32 %v1267_v47, %v1265_v49  ;;  %v3450_v47 = vld [vmem:[%s3693_s27 + $0x28c] sm:$0xf]  ;;  %v3276_v57 = vor.u32 %v3453_v46, %v3275_v43 }
 0x13c   : > { %v1266_v15 = vadd.f32 %v1264_v61, %v1262_v60  ;;  %v3288_v60 = vor.u32 %v3450_v47, %v3285_v45 }
 0x13d   : > { %v1273_v9 = vadd.f32 %v1271_v52, %v1269_v51  ;;  %v3449_v51 = vld [vmem:[%s3693_s27 + $0x284] sm:$0xf] }
 0x13e   : > { %v3277_v52 = vld [vmem:[%s3693_s27 + $0x2a0] sm:$0xf0] }
 0x13f   : > { %v3280_v61 = vor.u32 %v3449_v51, %v3277_v52 }
 0x140   : > { %v1188_v55 = vpop.f32.mrf.mxu2  ;;  %v1202_v56 = vpop.f32.mrf.mxu3 }
 0x141   : > { %v1214_v62 = vpop.f32.mrf.mxu0  ;;  %v1228_v0 = vpop.f32.mrf.mxu1  ;;  %v1268_v10 = vmul.f32 %v1188_v55, %v3963_v41  ;;  %v1272_v23 = vmul.f32 %v1202_v56, %v3986_v40  ;;  %v3284_v56 = vor.u32 %v3454_v37, %v3283_v36 }
 0x142   : > { %v1275_v1 = vmul.f32 %v1214_v62, %v3956_v33  ;;  %v1279_v17 = vmul.f32 %v1228_v0, %v3968_v50 }
 0x143   : > { %v1270_v18 = vadd.f32 %v1268_v10, %v1266_v15  ;;  %v3299_v15 = vld [vmem:[%s3693_s27 + $0x298] sm:$0xf] }
 0x144   : > { %3209 = vmatmul.msk.bf16.vlgmr.msrb.gmra.mxu0 %vm370_vm4, %v3719_v2  ;;  %3210 = vmatmul.msk.bf16.vlgmr.msrb.gmra.mxu1 %vm370_vm4, %v3719_v2  ;;  %v1277_v16 = vadd.f32 %v1275_v1, %v1273_v9 }
 0x145   : > { %3211 = vmatmul.msk.bf16.vlgmr.msrb.gmra.mxu2 %vm370_vm4, %v3719_v2  ;;  %3212 = vmatmul.msk.bf16.vlgmr.msrb.gmra.mxu3 %vm370_vm4, %v3719_v2  ;;  %v1274_v30 = vadd.f32 %v1272_v23, %v1270_v18  ;;  %v3452_v23 = vld [vmem:[%s3693_s27 + $0x29c] sm:$0xf] }
 0x146   : > { %2210 = vmatpush.bf16.msrb.mxu2 %v3250_v5  ;;  %2182 = vmatpush.bf16.msrb.mxu0 %v3242_v6  ;;  %v1281_v24 = vadd.f32 %v1279_v17, %v1277_v16  ;;  %v3456_v16 = vld [vmem:[%s3693_s27 + $0x2b4] sm:$0xf0] }
 0x147   : > { %2224 = vmatpush.bf16.msrb.mxu3 %v3254_v11  ;;  %2196 = vmatpush.bf16.msrb.mxu1 %v3246_v14  ;;  %v3300_v36 = vor.u32 %v3456_v16, %v3299_v15  ;;  %v3335_v16 = vld [vmem:[%s3693_s27 + $0x2e8] sm:$0xf0] }
 0x148   : > { %v1242_v21 = vpop.f32.mrf.mxu2  ;;  %v1256_v22 = vpop.f32.mrf.mxu3 }
 0x149   : > { %v1283_v25 = vmul.f32 %v1242_v21, %v3992_v42  ;;  %v1287_v26 = vmul.f32 %v1256_v22, %v3994_v8  ;;  %v1216_v27 = vpop.f32.mrf.mxu0  ;;  %v1230_v28 = vpop.f32.mrf.mxu1  ;;  %v3291_v21 = vld [vmem:[%s3693_s27 + $0x290] sm:$0xf] }
 0x14a   : > { %v1276_v29 = vmul.f32 %v1216_v27, %v4003_v12  ;;  %v1280_v44 = vmul.f32 %v1230_v28, %v4025_v32  ;;  %v3455_v22 = vld [vmem:[%s3693_s27 + $0x2ac] sm:$0xf0]  ;;  %v3451_v27 = vld [vmem:[%s3693_s27 + $0x294] sm:$0xf] }
 0x14b   : > { %v1285_v31 = vadd.f32 %v1283_v25, %v1281_v24  ;;  %v3293_v28 = vld [vmem:[%s3693_s27 + $0x2b0] sm:$0xf0]  ;;  %v3292_v37 = vor.u32 %v3455_v22, %v3291_v21 }
 0x14c   : > { %v1278_v35 = vadd.f32 %v1276_v29, %v1274_v30  ;;  %v3296_v47 = vor.u32 %v3451_v27, %v3293_v28 }
 0x14d   : > { %v1289_v34 = vadd.f32 %v1287_v26, %v1285_v31  ;;  %v3301_v26 = vld [vmem:[%s3693_s27 + $0x2b8] sm:$0xf0] }
 0x14e   : > { %v1282_v53 = vadd.f32 %v1280_v44, %v1278_v35  ;;  %v3304_v46 = vor.u32 %v3452_v23, %v3301_v26 }
 0x14f   : > { %3013 = vst [vmem:[%s4035_s6 + $0x40] sm:$0xff] %v1289_v34 }
 0x150   : > { %v1244_v49 = vpop.f32.mrf.mxu2  ;;  %v1258_v48 = vpop.f32.mrf.mxu3 }
 0x151   : > { %v1284_v39 = vmul.f32 %v1244_v49, %v4031_v38  ;;  %v1352_v54 = vpop.f32.mrf.mxu0  ;;  %v1366_v55 = vpop.f32.mrf.mxu1  ;;  %v1288_v59 = vmul.f32 %v1258_v48, %v4039_v63 }
 0x152   : > { %v1455_v5 = vmul.f32 %v1352_v54, %v3895_v3  ;;  %v1457_v6 = vmul.f32 %v1366_v55, %v3897_v4 }
 0x153   : > { %v1286_v58 = vadd.f32 %v1284_v39, %v1282_v53 }
 0x154   : > { %3255 = vmatmul.msk.bf16.vlgmr.msra.gmra.mxu0 %vm370_vm4, %v3719_v2  ;;  %3256 = vmatmul.msk.bf16.vlgmr.msra.gmra.mxu1 %vm370_vm4, %v3719_v2  ;;  %v1459_v14 = vadd.f32 %v1457_v6, %v1455_v5  ;;  %v3462_v5 = vld [vmem:[%s3693_s27 + $0x2e4] sm:$0xf0]  ;;  %v3325_v6 = vld [vmem:[%s3693_s27 + $0x2c0] sm:$0xf] }
 0x155   : > { %v1290_v62 = vadd.f32 %v1288_v59, %v1286_v58  ;;  %3257 = vmatmul.msk.bf16.vlgmr.msra.gmra.mxu2 %vm370_vm4, %v3719_v2  ;;  %3258 = vmatmul.msk.bf16.vlgmr.msra.gmra.mxu3 %vm370_vm4, %v3719_v2 }
 0x156   : > { %2348 = vmatpush.bf16.msra.mxu2 %v3284_v56  ;;  %2320 = vmatpush.bf16.msra.mxu0 %v3276_v57 }
 0x157   : > { %3014 = vst [vmem:[%s4035_s6 + $0x48] sm:$0xff] %v1290_v62  ;;  %2362 = vmatpush.bf16.msra.mxu3 %v3288_v60  ;;  %2334 = vmatpush.bf16.msra.mxu1 %v3280_v61 }
 0x158   : > { %v1380_v0 = vpop.f32.mrf.mxu2  ;;  %v1394_v1 = vpop.f32.mrf.mxu3 }
 0x159   : > { %v1354_v9 = vpop.f32.mrf.mxu0  ;;  %v1368_v10 = vpop.f32.mrf.mxu1  ;;  %v1461_v11 = vmul.f32 %v1380_v0, %v3909_v7  ;;  %v1465_v18 = vmul.f32 %v1394_v1, %v3917_v13  ;;  %v3333_v1 = vld [vmem:[%s3693_s27 + $0x2c8] sm:$0xf] }
 0x15a   : > { %v1456_v29 = vmul.f32 %v1354_v9, %v3925_v19  ;;  %v1458_v30 = vmul.f32 %v1368_v10, %v3927_v20  ;;  %v3461_v10 = vld [vmem:[%s3693_s27 + $0x2dc] sm:$0xf0] }
 0x15b   : > { %v1463_v17 = vadd.f32 %v1461_v11, %v1459_v14  ;;  %v3458_v11 = vld [vmem:[%s3693_s27 + $0x2cc] sm:$0xf]  ;;  %v3326_v26 = vor.u32 %v3461_v10, %v3325_v6 }
 0x15c   : > { %v1460_v49 = vadd.f32 %v1458_v30, %v1456_v29  ;;  %v3338_v29 = vor.u32 %v3458_v11, %v3335_v16 }
 0x15d   : > { %v1467_v43 = vadd.f32 %v1465_v18, %v1463_v17  ;;  %v3457_v17 = vld [vmem:[%s3693_s27 + $0x2c4] sm:$0xf] }
 0x15e   : > { %v3327_v18 = vld [vmem:[%s3693_s27 + $0x2e0] sm:$0xf0] }
 0x15f   : > { %v3330_v30 = vor.u32 %v3457_v17, %v3327_v18 }
 0x160   : > { %v1382_v24 = vpop.f32.mrf.mxu2  ;;  %v1396_v25 = vpop.f32.mrf.mxu3 }
 0x161   : > { %v1408_v31 = vpop.f32.mrf.mxu0  ;;  %v1422_v34 = vpop.f32.mrf.mxu1  ;;  %v1462_v44 = vmul.f32 %v1382_v24, %v3963_v41  ;;  %v1466_v39 = vmul.f32 %v1396_v25, %v3986_v40  ;;  %v3334_v25 = vor.u32 %v3462_v5, %v3333_v1 }
 0x162   : > { %v1469_v35 = vmul.f32 %v1408_v31, %v3956_v33  ;;  %v1473_v45 = vmul.f32 %v1422_v34, %v3968_v50 }
 0x163   : > { %v1464_v51 = vadd.f32 %v1462_v44, %v1460_v49  ;;  %v3349_v49 = vld [vmem:[%s3693_s27 + $0x2d8] sm:$0xf] }
 0x164   : > { %3259 = vmatmul.msk.bf16.vlgmr.msrb.gmra.mxu0 %vm370_vm4, %v3719_v2  ;;  %3260 = vmatmul.msk.bf16.vlgmr.msrb.gmra.mxu1 %vm370_vm4, %v3719_v2  ;;  %v1471_v48 = vadd.f32 %v1469_v35, %v1467_v43 }
 0x165   : > { %3261 = vmatmul.msk.bf16.vlgmr.msrb.gmra.mxu2 %vm370_vm4, %v3719_v2  ;;  %3262 = vmatmul.msk.bf16.vlgmr.msrb.gmra.mxu3 %vm370_vm4, %v3719_v2  ;;  %v1468_v60 = vadd.f32 %v1466_v39, %v1464_v51  ;;  %v3460_v39 = vld [vmem:[%s3693_s27 + $0x2dc] sm:$0xf] }
 0x166   : > { %2404 = vmatpush.bf16.msrb.mxu2 %v3300_v36  ;;  %2376 = vmatpush.bf16.msrb.mxu0 %v3292_v37  ;;  %v1475_v54 = vadd.f32 %v1473_v45, %v1471_v48  ;;  %v3464_v48 = vld [vmem:[%s3693_s27 + $0x2f4] sm:$0xf0] }
 0x167   : > { %2418 = vmatpush.bf16.msrb.mxu3 %v3304_v46  ;;  %2390 = vmatpush.bf16.msrb.mxu1 %v3296_v47  ;;  %v3350_v1 = vor.u32 %v3464_v48, %v3349_v49 }
 0x168   : > { %v1436_v52 = vpop.f32.mrf.mxu2  ;;  %v1450_v53 = vpop.f32.mrf.mxu3 }
 0x169   : > { %v1477_v55 = vmul.f32 %v1436_v52, %v3992_v42  ;;  %v1481_v56 = vmul.f32 %v1450_v53, %v3994_v8  ;;  %v1410_v57 = vpop.f32.mrf.mxu0  ;;  %v1424_v58 = vpop.f32.mrf.mxu1  ;;  %v3341_v52 = vld [vmem:[%s3693_s27 + $0x2d0] sm:$0xf] }
 0x16a   : > { %v1470_v59 = vmul.f32 %v1410_v57, %v4003_v12  ;;  %v1474_v9 = vmul.f32 %v1424_v58, %v4025_v32  ;;  %v3463_v53 = vld [vmem:[%s3693_s27 + $0x2ec] sm:$0xf0]  ;;  %v3459_v57 = vld [vmem:[%s3693_s27 + $0x2d4] sm:$0xf] }
 0x16b   : > { %v1479_v61 = vadd.f32 %v1477_v55, %v1475_v54  ;;  %v3343_v58 = vld [vmem:[%s3693_s27 + $0x2f0] sm:$0xf0]  ;;  %v3342_v5 = vor.u32 %v3463_v53, %v3341_v52 }
 0x16c   : > { %v1472_v0 = vadd.f32 %v1470_v59, %v1468_v60  ;;  %v3346_v11 = vor.u32 %v3459_v57, %v3343_v58 }
 0x16d   : > { %v1483_v62 = vadd.f32 %v1481_v56, %v1479_v61  ;;  %v3351_v56 = vld [vmem:[%s3693_s27 + $0x2f8] sm:$0xf0]  ;;  %s3553_s27 = scalar_lea.hbm %s4489_s2, 384 }
 0x16e   : > { %v1476_v21 = vadd.f32 %v1474_v9, %v1472_v0  ;;  %v3354_v10 = vor.u32 %v3460_v39, %v3351_v56  ;;  %p3555_p2 = scmp.lt.s32.totalorder %s3553_s27, %s3549_s24 }
 0x16f   : > { %3063 = vst [vmem:[%s4035_s6 + $0x50] sm:$0xff] %v1483_v62 }
 0x170   : > { %v1438_v14 = vpop.f32.mrf.mxu2  ;;  %v1452_v15 = vpop.f32.mrf.mxu3  ;;  %p3556_p3 = por %p3555_p2, %p3554_p1 }
 0x171   : > { %v1478_v22 = vmul.f32 %v1438_v14, %v4031_v38  ;;  %v1546_v23 = vpop.f32.mrf.mxu0  ;;  %v1560_v24 = vpop.f32.mrf.mxu1  ;;  %v1482_v28 = vmul.f32 %v1452_v15, %v4039_v63 }
 0x172   : > { %v1649_v36 = vmul.f32 %v1546_v23, %v3895_v3  ;;  %v1651_v37 = vmul.f32 %v1560_v24, %v3897_v4  ;;  %p3557_p5 = pnand %p3556_p3, %p3552_p0 }
 0x173   : > { %v1480_v27 = vadd.f32 %v1478_v22, %v1476_v21 }
 0x174   : > { %3305 = vmatmul.msk.bf16.vlgmr.msra.gmra.mxu0 %vm370_vm4, %v3719_v2  ;;  %3306 = vmatmul.msk.bf16.vlgmr.msra.gmra.mxu1 %vm370_vm4, %v3719_v2  ;;  %v1653_v47 = vadd.f32 %v1651_v37, %v1649_v36 }
 0x175   : > { %v1484_v31 = vadd.f32 %v1482_v28, %v1480_v27  ;;  %3307 = vmatmul.msk.bf16.vlgmr.msra.gmra.mxu2 %vm370_vm4, %v3719_v2  ;;  %3308 = vmatmul.msk.bf16.vlgmr.msra.gmra.mxu3 %vm370_vm4, %v3719_v2 }
 0x176   : > { %2542 = vmatpush.bf16.msra.mxu2 %v3334_v25  ;;  %2514 = vmatpush.bf16.msra.mxu0 %v3326_v26 }
 0x177   : > { %3064 = vst [vmem:[%s4035_s6 + $0x58] sm:$0xff] %v1484_v31  ;;  %2556 = vmatpush.bf16.msra.mxu3 %v3338_v29  ;;  %2528 = vmatpush.bf16.msra.mxu1 %v3330_v30 }
 0x178   : > { %v1574_v34 = vpop.f32.mrf.mxu2  ;;  %v1588_v35 = vpop.f32.mrf.mxu3 }
 0x179   : > { %v1548_v43 = vpop.f32.mrf.mxu0  ;;  %v1562_v44 = vpop.f32.mrf.mxu1  ;;  %v1655_v46 = vmul.f32 %v1574_v34, %v3909_v7  ;;  %v1659_v51 = vmul.f32 %v1588_v35, %v3917_v13 }
 0x17a   : > { %v1650_v59 = vmul.f32 %v1548_v43, %v3925_v19  ;;  %v1652_v60 = vmul.f32 %v1562_v44, %v3927_v20 }
 0x17b   : > { %v1657_v45 = vadd.f32 %v1655_v46, %v1653_v47 }
 0x17c   : > { %v1654_v14 = vadd.f32 %v1652_v60, %v1650_v59 }
 0x17d   : > { %v1661_v6 = vadd.f32 %v1659_v51, %v1657_v45 }
 0x180   : > { %v1576_v54 = vpop.f32.mrf.mxu2  ;;  %v1590_v55 = vpop.f32.mrf.mxu3 }
 0x181   : > { %v1602_v61 = vpop.f32.mrf.mxu0  ;;  %v1616_v62 = vpop.f32.mrf.mxu1  ;;  %v1656_v9 = vmul.f32 %v1576_v54, %v3963_v41  ;;  %v1660_v22 = vmul.f32 %v1590_v55, %v3986_v40 }
 0x182   : > { %v1663_v0 = vmul.f32 %v1602_v61, %v3956_v33  ;;  %v1667_v16 = vmul.f32 %v1616_v62, %v3968_v50 }
 0x183   : > { %v1658_v17 = vadd.f32 %v1656_v9, %v1654_v14 }
 0x184   : > { %3309 = vmatmul.msk.bf16.vlgmr.msrb.gmra.mxu0 %vm370_vm4, %v3719_v2  ;;  %3310 = vmatmul.msk.bf16.vlgmr.msrb.gmra.mxu1 %vm370_vm4, %v3719_v2  ;;  %v1665_v15 = vadd.f32 %v1663_v0, %v1661_v6 }
 0x185   : > { %3311 = vmatmul.msk.bf16.vlgmr.msrb.gmra.mxu2 %vm370_vm4, %v3719_v2  ;;  %3312 = vmatmul.msk.bf16.vlgmr.msrb.gmra.mxu3 %vm370_vm4, %v3719_v2  ;;  %v1662_v29 = vadd.f32 %v1660_v22, %v1658_v17 }
 0x186   : > { %2598 = vmatpush.bf16.msrb.mxu2 %v3350_v1  ;;  %2570 = vmatpush.bf16.msrb.mxu0 %v3342_v5  ;;  %v1669_v23 = vadd.f32 %v1667_v16, %v1665_v15 }
 0x187   : > { %2612 = vmatpush.bf16.msrb.mxu3 %v3354_v10  ;;  %2584 = vmatpush.bf16.msrb.mxu1 %v3346_v11 }
 0x188   : > { %v1630_v18 = vpop.f32.mrf.mxu2  ;;  %v1644_v21 = vpop.f32.mrf.mxu3 }
 0x189   : > { %v1671_v24 = vmul.f32 %v1630_v18, %v3992_v42  ;;  %v1675_v25 = vmul.f32 %v1644_v21, %v3994_v8  ;;  %v1604_v26 = vpop.f32.mrf.mxu0  ;;  %v1618_v27 = vpop.f32.mrf.mxu1 }
 0x18a   : > { %v1664_v28 = vmul.f32 %v1604_v26, %v4003_v12  ;;  %v1668_v35 = vmul.f32 %v1618_v27, %v4025_v32 }
 0x18b   : > { %v1673_v30 = vadd.f32 %v1671_v24, %v1669_v23 }
 0x18c   : > { %v1666_v34 = vadd.f32 %v1664_v28, %v1662_v29 }
 0x18d   : > { %v1677_v31 = vadd.f32 %v1675_v25, %v1673_v30 }
 0x18e   : > { %v1670_v43 = vadd.f32 %v1668_v35, %v1666_v34 }
 0x18f   : > { %3113 = vst [vmem:[%s4035_s6 + $0x60] sm:$0xff] %v1677_v31 }
 0x190   : > { %v1632_v36 = vpop.f32.mrf.mxu2  ;;  %v1646_v37 = vpop.f32.mrf.mxu3 }
 0x191   : > { %v1672_v44 = vmul.f32 %v1632_v36, %v4031_v38  ;;  %v1740_v46 = vpop.f32.mrf.mxu0  ;;  %v1754_v47 = vpop.f32.mrf.mxu1  ;;  %v1676_v48 = vmul.f32 %v1646_v37, %v4039_v63 }
 0x192   : > { %v1843_v53 = vmul.f32 %v1740_v46, %v3895_v3  ;;  %v1845_v39 = vmul.f32 %v1754_v47, %v3897_v4 }
 0x193   : > { %v1674_v49 = vadd.f32 %v1672_v44, %v1670_v43 }
 0x194   : > { %3355 = vmatmul.msk.bf16.vlgmr.msra.gmra.mxu0 %vm370_vm4, %v3719_v2  ;;  %3356 = vmatmul.msk.bf16.vlgmr.msra.gmra.mxu1 %vm370_vm4, %v3719_v2  ;;  %v1847_v57 = vadd.f32 %v1845_v39, %v1843_v53 }
 0x195   : > { %v1678_v45 = vadd.f32 %v1676_v48, %v1674_v49  ;;  %3357 = vmatmul.msk.bf16.vlgmr.msra.gmra.mxu2 %vm370_vm4, %v3719_v2  ;;  %3358 = vmatmul.msk.bf16.vlgmr.msra.gmra.mxu3 %vm370_vm4, %v3719_v2 }
 0x197   : > { %3114 = vst [vmem:[%s4035_s6 + $0x68] sm:$0xff] %v1678_v45 }
 0x198   : > { %v1768_v51 = vpop.f32.mrf.mxu2  ;;  %v1782_v52 = vpop.f32.mrf.mxu3 }
 0x199   : > { %v1742_v54 = vpop.f32.mrf.mxu0  ;;  %v1756_v55 = vpop.f32.mrf.mxu1  ;;  %v1849_v56 = vmul.f32 %v1768_v51, %v3909_v7  ;;  %v1853_v59 = vmul.f32 %v1782_v52, %v3917_v13 }
 0x19a   : > { %v1844_v62 = vmul.f32 %v1742_v54, %v3925_v19  ;;  %v1846_v0 = vmul.f32 %v1756_v55, %v3927_v20 }
 0x19b   : > { %v1851_v58 = vadd.f32 %v1849_v56, %v1847_v57 }
 0x19c   : > { %v1848_v11 = vadd.f32 %v1846_v0, %v1844_v62 }
 0x19d   : > { %v1855_v9 = vadd.f32 %v1853_v59, %v1851_v58 }
 0x1a0   : > { %v1770_v60 = vpop.f32.mrf.mxu2  ;;  %v1784_v61 = vpop.f32.mrf.mxu3 }
 0x1a1   : > { %v1796_v1 = vpop.f32.mrf.mxu0  ;;  %v1810_v5 = vpop.f32.mrf.mxu1  ;;  %v1850_v10 = vmul.f32 %v1770_v60, %v3963_v41  ;;  %v1854_v21 = vmul.f32 %v1784_v61, %v3986_v40 }
 0x1a2   : > { %v1857_v6 = vmul.f32 %v1796_v1, %v3956_v33  ;;  %v1861_v15 = vmul.f32 %v1810_v5, %v3968_v50 }
 0x1a3   : > { %v1852_v16 = vadd.f32 %v1850_v10, %v1848_v11 }
 0x1a4   : > { %3359 = vmatmul.msk.bf16.vlgmr.msrb.gmra.mxu0 %vm370_vm4, %v3719_v2  ;;  %3360 = vmatmul.msk.bf16.vlgmr.msrb.gmra.mxu1 %vm370_vm4, %v3719_v2  ;;  %v1859_v14 = vadd.f32 %v1857_v6, %v1855_v9 }
 0x1a5   : > { %3361 = vmatmul.msk.bf16.vlgmr.msrb.gmra.mxu2 %vm370_vm4, %v3719_v2  ;;  %3362 = vmatmul.msk.bf16.vlgmr.msrb.gmra.mxu3 %vm370_vm4, %v3719_v2  ;;  %v1856_v28 = vadd.f32 %v1854_v21, %v1852_v16 }
 0x1a6   : > { %v1863_v22 = vadd.f32 %v1861_v15, %v1859_v14 }
 0x1a8   : > { %v1824_v17 = vpop.f32.mrf.mxu2  ;;  %v1838_v18 = vpop.f32.mrf.mxu3 }
 0x1a9   : > { %v1865_v23 = vmul.f32 %v1824_v17, %v3992_v42  ;;  %v1869_v24 = vmul.f32 %v1838_v18, %v3994_v8  ;;  %v1798_v25 = vpop.f32.mrf.mxu0  ;;  %v1812_v26 = vpop.f32.mrf.mxu1 }
 0x1aa   : > { %v1858_v27 = vmul.f32 %v1798_v25, %v4003_v12  ;;  %v1862_v2 = vmul.f32 %v1812_v26, %v4025_v32 }
 0x1ab   : > { %v1867_v29 = vadd.f32 %v1865_v23, %v1863_v22 }
 0x1ac   : > { %v1860_v31 = vadd.f32 %v1858_v27, %v1856_v28 }
 0x1ad   : > { %v1871_v30 = vadd.f32 %v1869_v24, %v1867_v29 }
 0x1ae   : > { %v1864_v36 = vadd.f32 %v1862_v2, %v1860_v31 }
 0x1af   : > { %3163 = vst [vmem:[%s4035_s6 + $0x70] sm:$0xff] %v1871_v30 }
 0x1b0   : > { %v1826_v34 = vpop.f32.mrf.mxu2  ;;  %v1840_v35 = vpop.f32.mrf.mxu3 }
 0x1b1   : > { %v1866_v37 = vmul.f32 %v1826_v34, %v4031_v38  ;;  %v1934_v43 = vpop.f32.mrf.mxu0  ;;  %v1948_v44 = vpop.f32.mrf.mxu1  ;;  %v1870_v47 = vmul.f32 %v1840_v35, %v4039_v63 }
 0x1b2   : > { %v2037_v51 = vmul.f32 %v1934_v43, %v3895_v3  ;;  %v2039_v52 = vmul.f32 %v1948_v44, %v3897_v4 }
 0x1b3   : > { %v1868_v46 = vadd.f32 %v1866_v37, %v1864_v36 }
 0x1b4   : > { %v2041_v55 = vadd.f32 %v2039_v52, %v2037_v51 }
 0x1b5   : > { %v1872_v49 = vadd.f32 %v1870_v47, %v1868_v46 }
 0x1b7   : > { %3164 = vst [vmem:[%s4035_s6 + $0x78] sm:$0xff] %v1872_v49 }
 0x1b8   : > { %v1962_v48 = vpop.f32.mrf.mxu2  ;;  %v1976_v45 = vpop.f32.mrf.mxu3 }
 0x1b9   : > { %v1936_v53 = vpop.f32.mrf.mxu0  ;;  %v1950_v39 = vpop.f32.mrf.mxu1  ;;  %v2043_v54 = vmul.f32 %v1962_v48, %v3909_v7  ;;  %v2047_v57 = vmul.f32 %v1976_v45, %v3917_v13 }
 0x1ba   : > { %v2038_v60 = vmul.f32 %v1936_v53, %v3925_v19  ;;  %v2040_v61 = vmul.f32 %v1950_v39, %v3927_v20 }
 0x1bb   : > { %v2045_v56 = vadd.f32 %v2043_v54, %v2041_v55 }
 0x1bc   : > { %v2042_v9 = vadd.f32 %v2040_v61, %v2038_v60 }
 0x1bd   : > { %v2049_v5 = vadd.f32 %v2047_v57, %v2045_v56 }
 0x1c0   : > { %v1964_v58 = vpop.f32.mrf.mxu2  ;;  %v1978_v59 = vpop.f32.mrf.mxu3 }
 0x1c1   : > { %v1990_v62 = vpop.f32.mrf.mxu0  ;;  %v2004_v0 = vpop.f32.mrf.mxu1  ;;  %v2044_v6 = vmul.f32 %v1964_v58, %v3963_v41  ;;  %v2048_v17 = vmul.f32 %v1978_v59, %v3986_v40 }
 0x1c2   : > { %v2051_v1 = vmul.f32 %v1990_v62, %v3956_v33  ;;  %v2055_v11 = vmul.f32 %v2004_v0, %v3968_v50 }
 0x1c3   : > { %v2046_v14 = vadd.f32 %v2044_v6, %v2042_v9 }
 0x1c4   : > { %v2053_v10 = vadd.f32 %v2051_v1, %v2049_v5 }
 0x1c5   : > { %v2050_v26 = vadd.f32 %v2048_v17, %v2046_v14 }
 0x1c6   : > { %v2057_v18 = vadd.f32 %v2055_v11, %v2053_v10 }
 0x1c8   : > { %v2018_v15 = vpop.f32.mrf.mxu2  ;;  %v2032_v16 = vpop.f32.mrf.mxu3 }
 0x1c9   : > { %v2059_v21 = vmul.f32 %v2018_v15, %v3992_v42  ;;  %v2063_v22 = vmul.f32 %v2032_v16, %v3994_v8  ;;  %v1992_v23 = vpop.f32.mrf.mxu0  ;;  %v2006_v24 = vpop.f32.mrf.mxu1 }
 0x1ca   : > { %v2052_v25 = vmul.f32 %v1992_v23, %v4003_v12  ;;  %v2056_v30 = vmul.f32 %v2006_v24, %v4025_v32 }
 0x1cb   : > { %v2061_v27 = vadd.f32 %v2059_v21, %v2057_v18 }
 0x1cc   : > { %v2054_v29 = vadd.f32 %v2052_v25, %v2050_v26 }
 0x1cd   : > { %v2065_v28 = vadd.f32 %v2063_v22, %v2061_v27 }
 0x1ce   : > { %v2058_v34 = vadd.f32 %v2056_v30, %v2054_v29 }
 0x1cf   : > { %3213 = vst [vmem:[%s4035_s6 + $0x80] sm:$0xff] %v2065_v28 }
 0x1d0   : > { %v2020_v31 = vpop.f32.mrf.mxu2  ;;  %v2034_v2 = vpop.f32.mrf.mxu3 }
 0x1d1   : > { %v2060_v35 = vmul.f32 %v2020_v31, %v4031_v38  ;;  %v2128_v36 = vpop.f32.mrf.mxu0  ;;  %v2142_v37 = vpop.f32.mrf.mxu1  ;;  %v2064_v44 = vmul.f32 %v2034_v2, %v4039_v63 }
 0x1d2   : > { %v2231_v48 = vmul.f32 %v2128_v36, %v3895_v3  ;;  %v2233_v45 = vmul.f32 %v2142_v37, %v3897_v4 }
 0x1d3   : > { %v2062_v43 = vadd.f32 %v2060_v35, %v2058_v34 }
 0x1d4   : > { %v2235_v39 = vadd.f32 %v2233_v45, %v2231_v48 }
 0x1d5   : > { %v2066_v46 = vadd.f32 %v2064_v44, %v2062_v43 }
 0x1d7   : > { %3214 = vst [vmem:[%s4035_s6 + $0x88] sm:$0xff] %v2066_v46 }
 0x1d8   : > { %v2156_v47 = vpop.f32.mrf.mxu2  ;;  %v2170_v49 = vpop.f32.mrf.mxu3 }
 0x1d9   : > { %v2130_v51 = vpop.f32.mrf.mxu0  ;;  %v2144_v52 = vpop.f32.mrf.mxu1  ;;  %v2237_v53 = vmul.f32 %v2156_v47, %v3909_v7  ;;  %v2241_v55 = vmul.f32 %v2170_v49, %v3917_v13 }
 0x1da   : > { %v2232_v58 = vmul.f32 %v2130_v51, %v3925_v19  ;;  %v2234_v59 = vmul.f32 %v2144_v52, %v3927_v20 }
 0x1db   : > { %v2239_v54 = vadd.f32 %v2237_v53, %v2235_v39 }
 0x1dc   : > { %v2236_v5 = vadd.f32 %v2234_v59, %v2232_v58 }
 0x1dd   : > { %v2243_v0 = vadd.f32 %v2241_v55, %v2239_v54 }
 0x1e0   : > { %v2158_v56 = vpop.f32.mrf.mxu2  ;;  %v2172_v57 = vpop.f32.mrf.mxu3 }
 0x1e1   : > { %v2184_v60 = vpop.f32.mrf.mxu0  ;;  %v2198_v61 = vpop.f32.mrf.mxu1  ;;  %v2238_v1 = vmul.f32 %v2158_v56, %v3963_v41  ;;  %v2242_v15 = vmul.f32 %v2172_v57, %v3986_v40 }
 0x1e2   : > { %v2245_v62 = vmul.f32 %v2184_v60, %v3956_v33  ;;  %v2249_v9 = vmul.f32 %v2198_v61, %v3968_v50 }
 0x1e3   : > { %v2240_v10 = vadd.f32 %v2238_v1, %v2236_v5 }
 0x1e4   : > { %v2247_v6 = vadd.f32 %v2245_v62, %v2243_v0 }
 0x1e5   : > { %v2244_v24 = vadd.f32 %v2242_v15, %v2240_v10 }
 0x1e6   : > { %v2251_v16 = vadd.f32 %v2249_v9, %v2247_v6 }
 0x1e8   : > { %v2212_v11 = vpop.f32.mrf.mxu2  ;;  %v2226_v14 = vpop.f32.mrf.mxu3 }
 0x1e9   : > { %v2253_v17 = vmul.f32 %v2212_v11, %v3992_v42  ;;  %v2257_v18 = vmul.f32 %v2226_v14, %v3994_v8  ;;  %v2186_v21 = vpop.f32.mrf.mxu0  ;;  %v2200_v22 = vpop.f32.mrf.mxu1 }
 0x1ea   : > { %v2246_v23 = vmul.f32 %v2186_v21, %v4003_v12  ;;  %v2250_v28 = vmul.f32 %v2200_v22, %v4025_v32 }
 0x1eb   : > { %v2255_v25 = vadd.f32 %v2253_v17, %v2251_v16 }
 0x1ec   : > { %v2248_v27 = vadd.f32 %v2246_v23, %v2244_v24 }
 0x1ed   : > { %v2259_v26 = vadd.f32 %v2257_v18, %v2255_v25 }
 0x1ee   : > { %v2252_v31 = vadd.f32 %v2250_v28, %v2248_v27 }
 0x1ef   : > { %3263 = vst [vmem:[%s4035_s6 + $0x90] sm:$0xff] %v2259_v26 }
 0x1f0   : > { %v2214_v29 = vpop.f32.mrf.mxu2  ;;  %v2228_v30 = vpop.f32.mrf.mxu3 }
 0x1f1   : > { %v2254_v2 = vmul.f32 %v2214_v29, %v4031_v38  ;;  %v2322_v34 = vpop.f32.mrf.mxu0  ;;  %v2336_v35 = vpop.f32.mrf.mxu1  ;;  %v2258_v37 = vmul.f32 %v2228_v30, %v4039_v63 }
 0x1f2   : > { %v2425_v47 = vmul.f32 %v2322_v34, %v3895_v3  ;;  %v2427_v49 = vmul.f32 %v2336_v35, %v3897_v4 }
 0x1f3   : > { %v2256_v36 = vadd.f32 %v2254_v2, %v2252_v31 }
 0x1f4   : > { %v2429_v52 = vadd.f32 %v2427_v49, %v2425_v47 }
 0x1f5   : > { %v2260_v43 = vadd.f32 %v2258_v37, %v2256_v36 }
 0x1f7   : > { %3264 = vst [vmem:[%s4035_s6 + $0x98] sm:$0xff] %v2260_v43 }
 0x1f8   : > { %v2350_v44 = vpop.f32.mrf.mxu2  ;;  %v2364_v46 = vpop.f32.mrf.mxu3 }
 0x1f9   : > { %v2324_v48 = vpop.f32.mrf.mxu0  ;;  %v2338_v45 = vpop.f32.mrf.mxu1  ;;  %v2431_v51 = vmul.f32 %v2350_v44, %v3909_v7  ;;  %v2435_v39 = vmul.f32 %v2364_v46, %v3917_v13 }
 0x1fa   : > { %v2426_v56 = vmul.f32 %v2324_v48, %v3925_v19  ;;  %v2428_v57 = vmul.f32 %v2338_v45, %v3927_v20 }
 0x1fb   : > { %v2433_v53 = vadd.f32 %v2431_v51, %v2429_v52 }
 0x1fc   : > { %v2430_v0 = vadd.f32 %v2428_v57, %v2426_v56 }
 0x1fd   : > { %v2437_v61 = vadd.f32 %v2435_v39, %v2433_v53 }
 0x200   : > { %v2352_v54 = vpop.f32.mrf.mxu2  ;;  %v2366_v55 = vpop.f32.mrf.mxu3 }
 0x201   : > { %v2378_v58 = vpop.f32.mrf.mxu0  ;;  %v2392_v59 = vpop.f32.mrf.mxu1  ;;  %v2432_v62 = vmul.f32 %v2352_v54, %v3963_v41  ;;  %v2436_v11 = vmul.f32 %v2366_v55, %v3986_v40 }
 0x202   : > { %v2439_v60 = vmul.f32 %v2378_v58, %v3956_v33  ;;  %v2443_v5 = vmul.f32 %v2392_v59, %v3968_v50 }
 0x203   : > { %v2434_v6 = vadd.f32 %v2432_v62, %v2430_v0 }
 0x204   : > { %v2441_v1 = vadd.f32 %v2439_v60, %v2437_v61 }
 0x205   : > { %v2438_v22 = vadd.f32 %v2436_v11, %v2434_v6 }
 0x206   : > { %v2445_v14 = vadd.f32 %v2443_v5, %v2441_v1 }
 0x208   : > { %v2406_v9 = vpop.f32.mrf.mxu2  ;;  %v2420_v10 = vpop.f32.mrf.mxu3 }
 0x209   : > { %v2447_v15 = vmul.f32 %v2406_v9, %v3992_v42  ;;  %v2451_v16 = vmul.f32 %v2420_v10, %v3994_v8  ;;  %v2380_v17 = vpop.f32.mrf.mxu0  ;;  %v2394_v18 = vpop.f32.mrf.mxu1 }
 0x20a   : > { %v2440_v21 = vmul.f32 %v2380_v17, %v4003_v12  ;;  %v2444_v26 = vmul.f32 %v2394_v18, %v4025_v32 }
 0x20b   : > { %v2449_v23 = vadd.f32 %v2447_v15, %v2445_v14 }
 0x20c   : > { %v2442_v25 = vadd.f32 %v2440_v21, %v2438_v22 }
 0x20d   : > { %v2453_v24 = vadd.f32 %v2451_v16, %v2449_v23 }
 0x20e   : > { %v2446_v29 = vadd.f32 %v2444_v26, %v2442_v25 }
 0x20f   : > { %3313 = vst [vmem:[%s4035_s6 + $0xa0] sm:$0xff] %v2453_v24 }
 0x210   : > { %v2408_v27 = vpop.f32.mrf.mxu2  ;;  %v2422_v28 = vpop.f32.mrf.mxu3 }
 0x211   : > { %v2448_v30 = vmul.f32 %v2408_v27, %v4031_v38  ;;  %v2516_v31 = vpop.f32.mrf.mxu0  ;;  %v2530_v2 = vpop.f32.mrf.mxu1  ;;  %v2452_v35 = vmul.f32 %v2422_v28, %v4039_v63 }
 0x212   : > { %v2619_v44 = vmul.f32 %v2516_v31, %v3895_v3  ;;  %v2621_v46 = vmul.f32 %v2530_v2, %v3897_v4 }
 0x213   : > { %v2450_v34 = vadd.f32 %v2448_v30, %v2446_v29 }
 0x214   : > { %v2623_v45 = vadd.f32 %v2621_v46, %v2619_v44 }
 0x215   : > { %v2454_v36 = vadd.f32 %v2452_v35, %v2450_v34 }
 0x217   : > { %3314 = vst [vmem:[%s4035_s6 + $0xa8] sm:$0xff] %v2454_v36 }
 0x218   : > { %v2544_v37 = vpop.f32.mrf.mxu2  ;;  %v2558_v43 = vpop.f32.mrf.mxu3 }
 0x219   : > { %v2518_v47 = vpop.f32.mrf.mxu0  ;;  %v2532_v49 = vpop.f32.mrf.mxu1  ;;  %v2625_v48 = vmul.f32 %v2544_v37, %v3909_v7  ;;  %v2629_v52 = vmul.f32 %v2558_v43, %v3917_v13 }
 0x21a   : > { %v2620_v54 = vmul.f32 %v2518_v47, %v3925_v19  ;;  %v2622_v55 = vmul.f32 %v2532_v49, %v3927_v20 }
 0x21b   : > { %v2627_v51 = vadd.f32 %v2625_v48, %v2623_v45 }
 0x21c   : > { %v2624_v59 = vadd.f32 %v2622_v55, %v2620_v54 }
 0x21d   : > { %v2631_v4 = vadd.f32 %v2629_v52, %v2627_v51 }
 0x220   : > { %v2546_v53 = vpop.f32.mrf.mxu2  ;;  %v2560_v39 = vpop.f32.mrf.mxu3 }
 0x221   : > { %v2572_v56 = vpop.f32.mrf.mxu0  ;;  %v2586_v3 = vpop.f32.mrf.mxu1  ;;  %v2626_v58 = vmul.f32 %v2546_v53, %v3963_v41  ;;  %v2630_v19 = vmul.f32 %v2560_v39, %v3986_v40 }
 0x222   : > { %v2633_v57 = vmul.f32 %v2572_v56, %v3956_v33  ;;  %v2637_v60 = vmul.f32 %v2586_v3, %v3968_v50 }
 0x223   : > { %v2628_v61 = vadd.f32 %v2626_v58, %v2624_v59 }
 0x224   : > { %v2635_v7 = vadd.f32 %v2633_v57, %v2631_v4 }
 0x225   : > { %v2632_v41 = vadd.f32 %v2630_v19, %v2628_v61 }
 0x226   : > { %v2639_v0 = vadd.f32 %v2637_v60, %v2635_v7 }
 0x228   : > { %v2600_v13 = vpop.f32.mrf.mxu2  ;;  %v2614_v62 = vpop.f32.mrf.mxu3 }
 0x229   : > { %v2641_v20 = vmul.f32 %v2600_v13, %v3992_v42  ;;  %v2645_v33 = vmul.f32 %v2614_v62, %v3994_v8  ;;  %v2574_v1 = vpop.f32.mrf.mxu0  ;;  %v2588_v9 = vpop.f32.mrf.mxu1 }
 0x22a   : > { %v2634_v5 = vmul.f32 %v2574_v1, %v4003_v12  ;;  %v2638_v40 = vmul.f32 %v2588_v9, %v4025_v32 }
 0x22b   : > { %v2643_v6 = vadd.f32 %v2641_v20, %v2639_v0 }
 0x22c   : > { %v2636_v10 = vadd.f32 %v2634_v5, %v2632_v41 }
 0x22d   : > { %v2647_v50 = vadd.f32 %v2645_v33, %v2643_v6 }
 0x22e   : > { %v2640_v11 = vadd.f32 %v2638_v40, %v2636_v10 }
 0x22f   : > { %3363 = vst [vmem:[%s4035_s6 + $0xb0] sm:$0xff] %v2647_v50 }
 0x230   : > { %v2602_v42 = vpop.f32.mrf.mxu2  ;;  %v2616_v8 = vpop.f32.mrf.mxu3 }
 0x231   : > { %v2642_v12 = vmul.f32 %v2602_v42, %v4031_v38  ;;  %v2646_v15 = vmul.f32 %v2616_v8, %v4039_v63 }
 0x233   : > { %v2644_v14 = vadd.f32 %v2642_v12, %v2640_v11 }
 0x235   : > { %v2648_v16 = vadd.f32 %v2646_v15, %v2644_v14 }
 0x237   : > { %3364 = vst [vmem:[%s4035_s6 + $0xb8] sm:$0xff] %v2648_v16 }
 0x238   : > { %3560 = shalt.err (!%p3557_p5)
}
 0x239   : > { %s3613_s30 = smov 128   ;;  %s3614_s3 = smov 8  }
 0x23a   : > { %3476 = dma.vmem_to_hbm [thread:$0]  (%p3670_p4), %s2668_s12, 3072, %s2670_s18, %s2653_s20, %s3613_s30, %s3613_s30, %s3614_s3  }
 0x23b PF: > { %p3482_p6 = scmp.ge.s32.totalorder %s3611_s14, 2  ;;  %s2684_s4 = sand.u32 1, %s3591_s9  }
 0x23c   : > { %s2685_s5 = scalar_lea.sflag [#allocation3], %s2684_s4 }
 0x23d   : > { %p3479_p7 = pnand %p3482_p6, %p3677_p8 }
 0x23f   : > { %p3480_p9 = pneg %p3479_p7 }
 0x241   : > { %3586 = dma.done.wait (%p3480_p9), %s2685_s5, 3072  }
 0x242   : > { %3588 = vsyncadd (%p3480_p9), %s2685_s5, 4294964224  ;;  %s15_s14 = sadd.s32 1, %s3611_s14   ;;  %s4492_s9 = smov %s3595_s10 }
 0x243   : > { %p12_p10 = scmp.ge.s32.totalorder %s15_s14, 4   ;;  %s4493_s10 = smov %s3599_s11 }
 0x244   : > { %s4494_s11 = smov %s3683_s22  ;;  %s4495_s12 = smov %s3607_s13 }
 0x245   : > { %s4496_s13 = smov %s4498_s17  ;;  %14 = sbr.rel (!%p12_p10) target bundleno = 4 (0x4), region = 88 }
 0x24a   :  { %2691 = vsyncpa [#allocation3], 1 }
 0x24b   :  { %2693 = vsyncpa [#allocation3 + $0x1], 1 }

</bundles_post_ra>
